<compile_context>
chip_gen: v6e
topology: v6e:2x2x1
jax: 0.10.0
libtpu: 0.0.40
codegen_flags: <defaults>
</compile_context>

<pallas_src>
import functools

import numpy as np
import jax
import jax.numpy as jnp
from jax import lax
from jax.experimental import pallas as pl
from jax.experimental.pallas import tpu as pltpu


def _round_up(x, m):
    return ((x + m - 1) // m) * m


def _wordaware_kernel(ids_ref, time_ref, *refs, operator, use_shift, use_amp,
                      shift_off, amp_off, hp, sub_n, n_sub, vocab, dma_unroll):
    """One grid step = n_sub sub-tiles of sub_n tokens; gather double-buffered."""
    k = 0
    tab_ref = refs[k]; k += 1                       # [V, TW] concat table (HBM, pl.ANY)
    const_ref = None
    if operator != 'linear':
        const_ref = refs[k]; k += 1                 # [2, Hp]: row0 = cos offset, row1 = freqs
    out_ref = refs[k]; k += 1                       # [n_sub*sub_n, Hp] VMEM tile
    gbuf = refs[k]; k += 1                          # [2, sub_n, TW] gather double buffer
    sem = refs[k]; k += 1                           # DMA sems, one per slot

    base = pl.program_id(0) * (sub_n * n_sub)       # first (padded) token of this step

    def issue(sub_idx, slot):
        """Start row-gather DMAs for sub-tile `sub_idx` into slot `slot`."""
        row0 = base + sub_idx * sub_n

        def body(r, carry):
            wid = ids_ref[row0 + r]                               # scalar read from SMEM
            wid = jnp.minimum(jnp.maximum(wid, 0), vocab - 1)     # guard OOB word ids
            pltpu.make_async_copy(tab_ref.at[pl.ds(wid, 1), :],
                                  gbuf.at[slot, pl.ds(r, 1), :],
                                  sem.at[slot]).start()
            return carry

        lax.fori_loop(0, sub_n, body, 0, unroll=dma_unroll)

    def wait(slot):
        """Wait for the sub_n row DMAs previously issued into slot `slot`."""

        def body(r, carry):
            pltpu.make_async_copy(tab_ref.at[pl.ds(0, 1), :],
                                  gbuf.at[slot, pl.ds(r, 1), :],
                                  sem.at[slot]).wait()
            return carry

        lax.fori_loop(0, sub_n, body, 0, unroll=dma_unroll)

    # Loop-invariant constants, loaded once per grid step (hoisted out of loop).
    c_off = c_freq = None
    if operator != 'linear':
        c_off = const_ref[0:1, :]                                 # (1, Hp)
        if operator == 'mixed_fixed':
            c_freq = const_ref[1:2, :]                            # (1, Hp), [f, f]

    issue(0, 0)                                                   # prime slot 0

    def step(j, carry):
        slot = j % 2

        # Kick off next sub-tile's gather BEFORE waiting on the current one
        # (all SMEM id reads stay ahead of the .wait()).
        @pl.when(j + 1 < n_sub)
        def _():
            issue(j + 1, 1 - slot)

        wait(slot)

        view = gbuf.at[slot]                                      # (sub_n, TW) VMEM view
        r0 = pl.multiple_of(j * sub_n, 8)
        t = time_ref[pl.ds(r0, sub_n), :]                         # (sub_n, 1)
        para = view[:, :hp]                                       # (sub_n, Hp)

        if operator == 'linear':
            res = para * t
        else:
            if operator == 'mixed_fixed':
                phase = c_freq * t
            else:
                phase = para * t
            if use_shift:
                phase = phase + view[:, shift_off:shift_off + hp]
            res = jnp.cos(phase + c_off)                          # sin(x) == cos(x - pi/2)
            if operator == 'mixed_fixed':
                res = para * res
            elif use_amp:
                res = res * view[:, amp_off:amp_off + hp]

        out_ref[pl.ds(r0, sub_n), :] = res
        return carry

    lax.fori_loop(0, n_sub, step, 0)


class WordawareEncoderPallas:
    """JAX/Pallas port of WordawareEncoder (forward pass only).
    # TODO(synk): save_embeddings / load_embeddings are host-side parameter I/O,
    # not kernels; omitted.
    """

    def __init__(self, hidden_size, vocab_size, operator='linear',
                 add_phase_shift=True, add_amplitude=False, frequencies=None,
                 fre_pattern='1-10000', sub_n=128, n_sub=4, key=None):
        assert hidden_size % 2 == 0
        self.hidden_size = hidden_size
        self.vocab_size = vocab_size
        self.operator = operator
        self.add_phase_shift = add_phase_shift
        self.add_amplitude = add_amplitude
        self.sub_n = sub_n
        self.n_sub = n_sub

        if key is None:
            key = jax.random.PRNGKey(0)
        k1, k2, k3 = jax.random.split(key, 3)
        self.para = jax.random.normal(k1, (vocab_size, hidden_size), jnp.float32)
        self.shift = (jax.random.normal(k2, (vocab_size, hidden_size), jnp.float32)
                      if add_phase_shift else None)
        self.amp = (jax.random.normal(k3, (vocab_size, hidden_size), jnp.float32)
                    if add_amplitude else None)

        # which tables the forward actually reads (never gather the rest)
        self.need_shift = add_phase_shift and operator != 'linear'
        self.need_amp = add_amplitude and operator in ('cos', 'sin', 'mixed')

        H = hidden_size
        Hp = max(128, _round_up(H, 128))          # lane-dense gathers / stores
        self.hp = Hp

        def pad_h(a):
            return a if Hp == H else jnp.pad(a, ((0, 0), (0, Hp - H)))

        # one concatenated table -> a single row DMA per token
        cols = [pad_h(self.para)]
        self.shift_off = None
        self.amp_off = None
        if self.need_shift:
            self.shift_off = Hp * len(cols)
            cols.append(pad_h(self.shift))
        if self.need_amp:
            self.amp_off = Hp * len(cols)
            cols.append(pad_h(self.amp))
        self.table = jnp.concatenate(cols, axis=1) if len(cols) > 1 else cols[0]

        # mixed_fixed frequencies (kept unpadded for the pure-JAX reference)
        self.freq_half = None
        if operator == 'mixed_fixed':
            if frequencies is None:
                base, divided = [int(x) for x in fre_pattern.split('-')]
                frequencies = [base / np.power(divided, 2 * i / H)
                               for i in range(H // 2)]
            assert len(frequencies) == H // 2
            self.freq_half = jnp.asarray(frequencies, jnp.float32).reshape(1, H // 2)

        # (2, Hp) constant block: row 0 = cos phase offset (sin(x)=cos(x-pi/2)),
        # row 1 = fixed frequencies tiled to [f, f] (mixed_fixed only).
        self.consts = None
        if operator != 'linear':
            off = np.zeros((Hp,), np.float32)
            if operator in ('mixed', 'mixed_fixed'):
                off[H // 2:H] = -np.pi / 2.0
            elif operator == 'sin':
                off[:H] = -np.pi / 2.0
            freq_row = np.zeros((Hp,), np.float32)
            if operator == 'mixed_fixed':
                f = np.asarray(frequencies, np.float32)
                freq_row[:H // 2] = f
                freq_row[H // 2:H] = f
            self.consts = jnp.asarray(np.stack([off, freq_row], axis=0))

    def __call__(self, _time, word):
        N = int(_time.shape[0])
        H = self.hidden_size
        Hp = self.hp
        V = self.vocab_size

        # tile geometry: sub_n tokens per gather sub-tile, n_sub sub-tiles per
        # grid step (double-buffered inside the step).
        sub = min(self.sub_n, _round_up(N, 8))
        sub = max(8, (sub // 8) * 8)
        nsb = max(1, min(self.n_sub, pl.cdiv(N, sub)))
        st = sub * nsb                              # tokens per grid step
        n_pad = _round_up(N, st)
        grid_n = n_pad // st
        dma_unroll = min(8, sub)

        time2 = jnp.pad(_time.astype(jnp.float32), (0, n_pad - N)).reshape(n_pad, 1)
        word1 = jnp.pad(word.astype(jnp.int32), (0, n_pad - N)).reshape(n_pad)

        kernel = functools.partial(
            _wordaware_kernel,
            operator=self.operator,
            use_shift=self.need_shift,
            use_amp=self.need_amp,
            shift_off=self.shift_off,
            amp_off=self.amp_off,
            hp=Hp,
            sub_n=sub,
            n_sub=nsb,
            vocab=V,
            dma_unroll=dma_unroll,
        )

        in_specs = [pl.BlockSpec((st, 1), lambda i, ids: (i, 0)),   # time tile (VMEM)
                    pl.BlockSpec(memory_space=pl.ANY)]               # concat table (HBM)
        args = [time2, self.table]
        if self.operator != 'linear':
            in_specs.append(pl.BlockSpec((2, Hp), lambda i, ids: (0, 0)))
            args.append(self.consts)

        tw = int(self.table.shape[1])
        scratch = [pltpu.VMEM((2, sub, tw), jnp.float32),   # gather double buffer
                   pltpu.SemaphoreType.DMA((2,))]           # per-slot DMA sems

        # TODO(synk): for H < 128 a token-folding lane repack would avoid the
        # padded gather/store bytes entirely; padding to 128 chosen for simplicity.
        out = pl.pallas_call(
            kernel,
            out_shape=jax.ShapeDtypeStruct((n_pad, Hp), jnp.float32),
            grid_spec=pltpu.PrefetchScalarGridSpec(
                num_scalar_prefetch=1,                      # word ids -> SMEM
                grid=(grid_n,),
                in_specs=in_specs,
                out_specs=pl.BlockSpec((st, Hp), lambda i, ids: (i, 0)),
                scratch_shapes=scratch),
            compiler_params=pltpu.CompilerParams(
                dimension_semantics=("parallel",)),
        )(word1, *args)

        if n_pad != N or Hp != H:
            out = out[:N, :H]
        return out


def _reference_forward(enc, _time, word):
    """Pure-JAX reference mirroring the PyTorch forward exactly."""
    H = enc.hidden_size
    Hh = H // 2
    t = _time.astype(jnp.float32)[:, None]
    para = enc.para[word]
    if enc.operator == 'linear':
        return para * t
    if enc.operator == 'mixed_fixed':
        omega = enc.freq_half * t
        if enc.add_phase_shift:
            ps = enc.shift[word]
            phase = jnp.concatenate(
                [jnp.cos(omega + ps[:, :Hh]), jnp.sin(omega + ps[:, Hh:])], axis=-1)
        else:
            phase = jnp.concatenate([jnp.cos(omega), jnp.sin(omega)], axis=-1)
        return para * phase
    phase = para * t
    if enc.add_phase_shift:
        phase = phase + enc.shift[word]
    if enc.operator == 'cos':
        out = jnp.cos(phase)
    elif enc.operator == 'sin':
        out = jnp.sin(phase)
    elif enc.operator == 'mixed':
        out = jnp.concatenate(
            [jnp.cos(phase[:, :Hh]), jnp.sin(phase[:, Hh:])], axis=-1)
    else:
        raise NotImplementedError
    if enc.add_amplitude:
        out = out * enc.amp[word]
    return out


if __name__ == "__main__":
    hidden_size = 32
    vocab_size = 64
    N = 40      # with sub_n=8, n_sub=2: 3 grid steps, padded last step, inner pipeline

    key = jax.random.PRNGKey(0)
    k_t, k_w, k_p = jax.random.split(key, 3)
    _time = jax.random.uniform(k_t, (N,), jnp.float32, minval=0.0, maxval=10.0)
    word = jax.random.randint(k_w, (N,), 0, vocab_size, dtype=jnp.int32)

    configs = [
        dict(operator='linear', add_phase_shift=True, add_amplitude=False),
        dict(operator='mixed_fixed', add_phase_shift=True, add_amplitude=False),
        dict(operator='mixed_fixed', add_phase_shift=False, add_amplitude=False),
        dict(operator='mixed', add_phase_shift=True, add_amplitude=True),
        dict(operator='cos', add_phase_shift=True, add_amplitude=True),
        dict(operator='sin', add_phase_shift=False, add_amplitude=False),
    ]

    ok = True
    for cfg in configs:
        # small tiles to exercise the grid + in-kernel double-buffered gather
        enc = WordawareEncoderPallas(hidden_size, vocab_size, sub_n=8, n_sub=2,
                                     key=k_p, **cfg)
        out = jax.block_until_ready(enc(_time, word))
        ref = _reference_forward(enc, _time, word)
        if not np.allclose(np.asarray(out), np.asarray(ref), rtol=1e-4, atol=1e-4):
            ok = False
            print(f"MISMATCH for config {cfg}")

    # one run with the default (large) tiling path: whole batch in a single step
    enc = WordawareEncoderPallas(hidden_size, vocab_size, key=k_p,
                                 operator='mixed', add_phase_shift=True,
                                 add_amplitude=False)
    out = jax.block_until_ready(enc(_time, word))
    ref = _reference_forward(enc, _time, word)
    if not np.allclose(np.asarray(out), np.asarray(ref), rtol=1e-4, atol=1e-4):
        ok = False
        print("MISMATCH for default-tiling config")

    if ok:
        print("KERNEL_OK")
</pallas_src>

<mosaic_0001>
module attributes {stable_mosaic.version = 11 : i64} {
  func.func @_wordaware_kernel(%arg0: i32, %arg1: memref<48xi32, #tpu.memory_space<smem>>, %arg2: memref<16x1xf32, #tpu.memory_space<vmem>>, %arg3: memref<64x128xf32, #tpu.memory_space<any>>, %arg4: memref<16x128xf32, #tpu.memory_space<vmem>>, %arg5: memref<2x8x128xf32, #tpu.memory_space<vmem>>, %arg6: memref<2x!tpu.dma_semaphore, #tpu.memory_space<semaphore_mem>>) attributes {dimension_semantics = [#tpu.dimension_semantics<parallel>], iteration_bounds = array<i64: 3>, scalar_prefetch = 1 : i64, scratch_operands = 2 : i64, tpu.core_type = #tpu.core_type<tc>, window_params = [{transform_indices = @transform_0, window_bounds = array<i64: 16, 1>}, {}, {transform_indices = @transform_2, window_bounds = array<i64: 16, 128>}]} {
    %c16_i32 = arith.constant 16 : i32
    %0 = arith.muli %arg0, %c16_i32 : i32
    %c0_i32 = arith.constant 0 : i32
    %1 = arith.addi %0, %c0_i32 : i32
    %c0_i32_0 = arith.constant 0 : i32
    %2 = arith.addi %1, %c0_i32_0 : i32
    %3 = arith.index_cast %2 : i32 to index
    %4 = memref.load %arg1[%3] : memref<48xi32, #tpu.memory_space<smem>>
    %c0_i32_1 = arith.constant 0 : i32
    %5 = arith.maxsi %4, %c0_i32_1 : i32
    %c63_i32 = arith.constant 63 : i32
    %6 = arith.minsi %5, %c63_i32 : i32
    %c0_i32_2 = arith.constant 0 : i32
    %c0_i32_3 = arith.constant 0 : i32
    %c0_i32_4 = arith.constant 0 : i32
    %7 = tpu.memref_slice %arg3[%6, %c0_i32_4] : memref<64x128xf32, #tpu.memory_space<any>> -> memref<1x128xf32, #tpu.memory_space<any>>
    %c0_i32_5 = arith.constant 0 : i32
    %8 = tpu.memref_slice %arg5[%c0_i32_2, %c0_i32_0, %c0_i32_5] : memref<2x8x128xf32, #tpu.memory_space<vmem>> -> memref<1x1x128xf32, #tpu.memory_space<vmem>>
    %9 = tpu.memref_squeeze %8 : memref<1x1x128xf32, #tpu.memory_space<vmem>> -> memref<1x128xf32, #tpu.memory_space<vmem>>
    %10 = tpu.memref_slice %arg6[%c0_i32_3] : memref<2x!tpu.dma_semaphore, #tpu.memory_space<semaphore_mem>> -> memref<1x!tpu.dma_semaphore, #tpu.memory_space<semaphore_mem>>
    %11 = tpu.memref_squeeze %10 : memref<1x!tpu.dma_semaphore, #tpu.memory_space<semaphore_mem>> -> memref<!tpu.dma_semaphore, #tpu.memory_space<semaphore_mem>>
    tpu.enqueue_dma source(%7 : memref<1x128xf32, #tpu.memory_space<any>>) target(%9 : memref<1x128xf32, #tpu.memory_space<vmem>>) target_semaphore(%11 : memref<!tpu.dma_semaphore, #tpu.memory_space<semaphore_mem>>)
    %c1_i32 = arith.constant 1 : i32
    %12 = arith.addi %1, %c1_i32 : i32
    %13 = arith.index_cast %12 : i32 to index
    %14 = memref.load %arg1[%13] : memref<48xi32, #tpu.memory_space<smem>>
    %c0_i32_6 = arith.constant 0 : i32
    %15 = arith.maxsi %14, %c0_i32_6 : i32
    %c63_i32_7 = arith.constant 63 : i32
    %16 = arith.minsi %15, %c63_i32_7 : i32
    %c0_i32_8 = arith.constant 0 : i32
    %c0_i32_9 = arith.constant 0 : i32
    %c0_i32_10 = arith.constant 0 : i32
    %17 = tpu.memref_slice %arg3[%16, %c0_i32_10] : memref<64x128xf32, #tpu.memory_space<any>> -> memref<1x128xf32, #tpu.memory_space<any>>
    %c0_i32_11 = arith.constant 0 : i32
    %18 = tpu.memref_slice %arg5[%c0_i32_8, %c1_i32, %c0_i32_11] : memref<2x8x128xf32, #tpu.memory_space<vmem>> -> memref<1x1x128xf32, #tpu.memory_space<vmem>>
    %19 = tpu.memref_squeeze %18 : memref<1x1x128xf32, #tpu.memory_space<vmem>> -> memref<1x128xf32, #tpu.memory_space<vmem>>
    %20 = tpu.memref_slice %arg6[%c0_i32_9] : memref<2x!tpu.dma_semaphore, #tpu.memory_space<semaphore_mem>> -> memref<1x!tpu.dma_semaphore, #tpu.memory_space<semaphore_mem>>
    %21 = tpu.memref_squeeze %20 : memref<1x!tpu.dma_semaphore, #tpu.memory_space<semaphore_mem>> -> memref<!tpu.dma_semaphore, #tpu.memory_space<semaphore_mem>>
    tpu.enqueue_dma source(%17 : memref<1x128xf32, #tpu.memory_space<any>>) target(%19 : memref<1x128xf32, #tpu.memory_space<vmem>>) target_semaphore(%21 : memref<!tpu.dma_semaphore, #tpu.memory_space<semaphore_mem>>)
    %c2_i32 = arith.constant 2 : i32
    %22 = arith.addi %1, %c2_i32 : i32
    %23 = arith.index_cast %22 : i32 to index
    %24 = memref.load %arg1[%23] : memref<48xi32, #tpu.memory_space<smem>>
    %c0_i32_12 = arith.constant 0 : i32
    %25 = arith.maxsi %24, %c0_i32_12 : i32
    %c63_i32_13 = arith.constant 63 : i32
    %26 = arith.minsi %25, %c63_i32_13 : i32
    %c0_i32_14 = arith.constant 0 : i32
    %c0_i32_15 = arith.constant 0 : i32
    %c0_i32_16 = arith.constant 0 : i32
    %27 = tpu.memref_slice %arg3[%26, %c0_i32_16] : memref<64x128xf32, #tpu.memory_space<any>> -> memref<1x128xf32, #tpu.memory_space<any>>
    %c0_i32_17 = arith.constant 0 : i32
    %28 = tpu.memref_slice %arg5[%c0_i32_14, %c2_i32, %c0_i32_17] : memref<2x8x128xf32, #tpu.memory_space<vmem>> -> memref<1x1x128xf32, #tpu.memory_space<vmem>>
    %29 = tpu.memref_squeeze %28 : memref<1x1x128xf32, #tpu.memory_space<vmem>> -> memref<1x128xf32, #tpu.memory_space<vmem>>
    %30 = tpu.memref_slice %arg6[%c0_i32_15] : memref<2x!tpu.dma_semaphore, #tpu.memory_space<semaphore_mem>> -> memref<1x!tpu.dma_semaphore, #tpu.memory_space<semaphore_mem>>
    %31 = tpu.memref_squeeze %30 : memref<1x!tpu.dma_semaphore, #tpu.memory_space<semaphore_mem>> -> memref<!tpu.dma_semaphore, #tpu.memory_space<semaphore_mem>>
    tpu.enqueue_dma source(%27 : memref<1x128xf32, #tpu.memory_space<any>>) target(%29 : memref<1x128xf32, #tpu.memory_space<vmem>>) target_semaphore(%31 : memref<!tpu.dma_semaphore, #tpu.memory_space<semaphore_mem>>)
    %c3_i32 = arith.constant 3 : i32
    %32 = arith.addi %1, %c3_i32 : i32
    %33 = arith.index_cast %32 : i32 to index
    %34 = memref.load %arg1[%33] : memref<48xi32, #tpu.memory_space<smem>>
    %c0_i32_18 = arith.constant 0 : i32
    %35 = arith.maxsi %34, %c0_i32_18 : i32
    %c63_i32_19 = arith.constant 63 : i32
    %36 = arith.minsi %35, %c63_i32_19 : i32
    %c0_i32_20 = arith.constant 0 : i32
    %c0_i32_21 = arith.constant 0 : i32
    %c0_i32_22 = arith.constant 0 : i32
    %37 = tpu.memref_slice %arg3[%36, %c0_i32_22] : memref<64x128xf32, #tpu.memory_space<any>> -> memref<1x128xf32, #tpu.memory_space<any>>
    %c0_i32_23 = arith.constant 0 : i32
    %38 = tpu.memref_slice %arg5[%c0_i32_20, %c3_i32, %c0_i32_23] : memref<2x8x128xf32, #tpu.memory_space<vmem>> -> memref<1x1x128xf32, #tpu.memory_space<vmem>>
    %39 = tpu.memref_squeeze %38 : memref<1x1x128xf32, #tpu.memory_space<vmem>> -> memref<1x128xf32, #tpu.memory_space<vmem>>
    %40 = tpu.memref_slice %arg6[%c0_i32_21] : memref<2x!tpu.dma_semaphore, #tpu.memory_space<semaphore_mem>> -> memref<1x!tpu.dma_semaphore, #tpu.memory_space<semaphore_mem>>
    %41 = tpu.memref_squeeze %40 : memref<1x!tpu.dma_semaphore, #tpu.memory_space<semaphore_mem>> -> memref<!tpu.dma_semaphore, #tpu.memory_space<semaphore_mem>>
    tpu.enqueue_dma source(%37 : memref<1x128xf32, #tpu.memory_space<any>>) target(%39 : memref<1x128xf32, #tpu.memory_space<vmem>>) target_semaphore(%41 : memref<!tpu.dma_semaphore, #tpu.memory_space<semaphore_mem>>)
    %c4_i32 = arith.constant 4 : i32
    %42 = arith.addi %1, %c4_i32 : i32
    %43 = arith.index_cast %42 : i32 to index
    %44 = memref.load %arg1[%43] : memref<48xi32, #tpu.memory_space<smem>>
    %c0_i32_24 = arith.constant 0 : i32
    %45 = arith.maxsi %44, %c0_i32_24 : i32
    %c63_i32_25 = arith.constant 63 : i32
    %46 = arith.minsi %45, %c63_i32_25 : i32
    %c0_i32_26 = arith.constant 0 : i32
    %c0_i32_27 = arith.constant 0 : i32
    %c0_i32_28 = arith.constant 0 : i32
    %47 = tpu.memref_slice %arg3[%46, %c0_i32_28] : memref<64x128xf32, #tpu.memory_space<any>> -> memref<1x128xf32, #tpu.memory_space<any>>
    %c0_i32_29 = arith.constant 0 : i32
    %48 = tpu.memref_slice %arg5[%c0_i32_26, %c4_i32, %c0_i32_29] : memref<2x8x128xf32, #tpu.memory_space<vmem>> -> memref<1x1x128xf32, #tpu.memory_space<vmem>>
    %49 = tpu.memref_squeeze %48 : memref<1x1x128xf32, #tpu.memory_space<vmem>> -> memref<1x128xf32, #tpu.memory_space<vmem>>
    %50 = tpu.memref_slice %arg6[%c0_i32_27] : memref<2x!tpu.dma_semaphore, #tpu.memory_space<semaphore_mem>> -> memref<1x!tpu.dma_semaphore, #tpu.memory_space<semaphore_mem>>
    %51 = tpu.memref_squeeze %50 : memref<1x!tpu.dma_semaphore, #tpu.memory_space<semaphore_mem>> -> memref<!tpu.dma_semaphore, #tpu.memory_space<semaphore_mem>>
    tpu.enqueue_dma source(%47 : memref<1x128xf32, #tpu.memory_space<any>>) target(%49 : memref<1x128xf32, #tpu.memory_space<vmem>>) target_semaphore(%51 : memref<!tpu.dma_semaphore, #tpu.memory_space<semaphore_mem>>)
    %c5_i32 = arith.constant 5 : i32
    %52 = arith.addi %1, %c5_i32 : i32
    %53 = arith.index_cast %52 : i32 to index
    %54 = memref.load %arg1[%53] : memref<48xi32, #tpu.memory_space<smem>>
    %c0_i32_30 = arith.constant 0 : i32
    %55 = arith.maxsi %54, %c0_i32_30 : i32
    %c63_i32_31 = arith.constant 63 : i32
    %56 = arith.minsi %55, %c63_i32_31 : i32
    %c0_i32_32 = arith.constant 0 : i32
    %c0_i32_33 = arith.constant 0 : i32
    %c0_i32_34 = arith.constant 0 : i32
    %57 = tpu.memref_slice %arg3[%56, %c0_i32_34] : memref<64x128xf32, #tpu.memory_space<any>> -> memref<1x128xf32, #tpu.memory_space<any>>
    %c0_i32_35 = arith.constant 0 : i32
    %58 = tpu.memref_slice %arg5[%c0_i32_32, %c5_i32, %c0_i32_35] : memref<2x8x128xf32, #tpu.memory_space<vmem>> -> memref<1x1x128xf32, #tpu.memory_space<vmem>>
    %59 = tpu.memref_squeeze %58 : memref<1x1x128xf32, #tpu.memory_space<vmem>> -> memref<1x128xf32, #tpu.memory_space<vmem>>
    %60 = tpu.memref_slice %arg6[%c0_i32_33] : memref<2x!tpu.dma_semaphore, #tpu.memory_space<semaphore_mem>> -> memref<1x!tpu.dma_semaphore, #tpu.memory_space<semaphore_mem>>
    %61 = tpu.memref_squeeze %60 : memref<1x!tpu.dma_semaphore, #tpu.memory_space<semaphore_mem>> -> memref<!tpu.dma_semaphore, #tpu.memory_space<semaphore_mem>>
    tpu.enqueue_dma source(%57 : memref<1x128xf32, #tpu.memory_space<any>>) target(%59 : memref<1x128xf32, #tpu.memory_space<vmem>>) target_semaphore(%61 : memref<!tpu.dma_semaphore, #tpu.memory_space<semaphore_mem>>)
    %c6_i32 = arith.constant 6 : i32
    %62 = arith.addi %1, %c6_i32 : i32
    %63 = arith.index_cast %62 : i32 to index
    %64 = memref.load %arg1[%63] : memref<48xi32, #tpu.memory_space<smem>>
    %c0_i32_36 = arith.constant 0 : i32
    %65 = arith.maxsi %64, %c0_i32_36 : i32
    %c63_i32_37 = arith.constant 63 : i32
    %66 = arith.minsi %65, %c63_i32_37 : i32
    %c0_i32_38 = arith.constant 0 : i32
    %c0_i32_39 = arith.constant 0 : i32
    %c0_i32_40 = arith.constant 0 : i32
    %67 = tpu.memref_slice %arg3[%66, %c0_i32_40] : memref<64x128xf32, #tpu.memory_space<any>> -> memref<1x128xf32, #tpu.memory_space<any>>
    %c0_i32_41 = arith.constant 0 : i32
    %68 = tpu.memref_slice %arg5[%c0_i32_38, %c6_i32, %c0_i32_41] : memref<2x8x128xf32, #tpu.memory_space<vmem>> -> memref<1x1x128xf32, #tpu.memory_space<vmem>>
    %69 = tpu.memref_squeeze %68 : memref<1x1x128xf32, #tpu.memory_space<vmem>> -> memref<1x128xf32, #tpu.memory_space<vmem>>
    %70 = tpu.memref_slice %arg6[%c0_i32_39] : memref<2x!tpu.dma_semaphore, #tpu.memory_space<semaphore_mem>> -> memref<1x!tpu.dma_semaphore, #tpu.memory_space<semaphore_mem>>
    %71 = tpu.memref_squeeze %70 : memref<1x!tpu.dma_semaphore, #tpu.memory_space<semaphore_mem>> -> memref<!tpu.dma_semaphore, #tpu.memory_space<semaphore_mem>>
    tpu.enqueue_dma source(%67 : memref<1x128xf32, #tpu.memory_space<any>>) target(%69 : memref<1x128xf32, #tpu.memory_space<vmem>>) target_semaphore(%71 : memref<!tpu.dma_semaphore, #tpu.memory_space<semaphore_mem>>)
    %c7_i32 = arith.constant 7 : i32
    %72 = arith.addi %1, %c7_i32 : i32
    %73 = arith.index_cast %72 : i32 to index
    %74 = memref.load %arg1[%73] : memref<48xi32, #tpu.memory_space<smem>>
    %c0_i32_42 = arith.constant 0 : i32
    %75 = arith.maxsi %74, %c0_i32_42 : i32
    %c63_i32_43 = arith.constant 63 : i32
    %76 = arith.minsi %75, %c63_i32_43 : i32
    %c0_i32_44 = arith.constant 0 : i32
    %c0_i32_45 = arith.constant 0 : i32
    %c0_i32_46 = arith.constant 0 : i32
    %77 = tpu.memref_slice %arg3[%76, %c0_i32_46] : memref<64x128xf32, #tpu.memory_space<any>> -> memref<1x128xf32, #tpu.memory_space<any>>
    %c0_i32_47 = arith.constant 0 : i32
    %78 = tpu.memref_slice %arg5[%c0_i32_44, %c7_i32, %c0_i32_47] : memref<2x8x128xf32, #tpu.memory_space<vmem>> -> memref<1x1x128xf32, #tpu.memory_space<vmem>>
    %79 = tpu.memref_squeeze %78 : memref<1x1x128xf32, #tpu.memory_space<vmem>> -> memref<1x128xf32, #tpu.memory_space<vmem>>
    %80 = tpu.memref_slice %arg6[%c0_i32_45] : memref<2x!tpu.dma_semaphore, #tpu.memory_space<semaphore_mem>> -> memref<1x!tpu.dma_semaphore, #tpu.memory_space<semaphore_mem>>
    %81 = tpu.memref_squeeze %80 : memref<1x!tpu.dma_semaphore, #tpu.memory_space<semaphore_mem>> -> memref<!tpu.dma_semaphore, #tpu.memory_space<semaphore_mem>>
    tpu.enqueue_dma source(%77 : memref<1x128xf32, #tpu.memory_space<any>>) target(%79 : memref<1x128xf32, #tpu.memory_space<vmem>>) target_semaphore(%81 : memref<!tpu.dma_semaphore, #tpu.memory_space<semaphore_mem>>)
    %c8_i32 = arith.constant 8 : i32
    %c0_i32_48 = arith.constant 0 : i32
    %c2_i32_49 = arith.constant 2 : i32
    %82 = arith.addi %c0_i32_48, %c2_i32_49 : i32
    %c1_i32_50 = arith.constant 1 : i32
    scf.for %arg7 = %c0_i32_48 to %82 step %c1_i32_50  : i32 {
      %c2_i32_52 = arith.constant 2 : i32
      %c0_i32_53 = arith.constant 0 : i32
      %83 = arith.cmpi eq, %c2_i32_52, %c0_i32_53 : i32
      %c1_i32_54 = arith.constant 1 : i32
      %84 = arith.select %83, %c1_i32_54, %c2_i32_52 : i32
      %85 = arith.remsi %arg7, %84 : i32
      %c0_i32_55 = arith.constant 0 : i32
      %86 = arith.cmpi ne, %85, %c0_i32_55 : i32
      %c0_i32_56 = arith.constant 0 : i32
      %87 = arith.cmpi slt, %85, %c0_i32_56 : i32
      %c0_i32_57 = arith.constant 0 : i32
      %88 = arith.cmpi slt, %84, %c0_i32_57 : i32
      %89 = arith.xori %87, %88 : i1
      %90 = arith.andi %89, %86 : i1
      %91 = arith.addi %85, %84 : i32
      %92 = arith.select %90, %91, %85 : i32
      %c1_i32_58 = arith.constant 1 : i32
      %93 = arith.addi %arg7, %c1_i32_58 : i32
      %c2_i32_59 = arith.constant 2 : i32
      %94 = arith.cmpi slt, %93, %c2_i32_59 : i32
      %95 = arith.extui %94 : i1 to i32
      %c0_i32_60 = arith.constant 0 : i32
      %96 = arith.cmpi ne, %95, %c0_i32_60 : i32
      scf.if %96 {
        %c1_i32_100 = arith.constant 1 : i32
        %148 = arith.addi %arg7, %c1_i32_100 : i32
        %c1_i32_101 = arith.constant 1 : i32
        %149 = arith.subi %c1_i32_101, %92 : i32
        %c8_i32_102 = arith.constant 8 : i32
        %150 = arith.muli %148, %c8_i32_102 : i32
        %151 = arith.addi %0, %150 : i32
        %c0_i32_103 = arith.constant 0 : i32
        %152 = arith.addi %151, %c0_i32_103 : i32
        %153 = arith.index_cast %152 : i32 to index
        %154 = memref.load %arg1[%153] : memref<48xi32, #tpu.memory_space<smem>>
        %c0_i32_104 = arith.constant 0 : i32
        %155 = arith.maxsi %154, %c0_i32_104 : i32
        %c63_i32_105 = arith.constant 63 : i32
        %156 = arith.minsi %155, %c63_i32_105 : i32
        %c0_i32_106 = arith.constant 0 : i32
        %157 = tpu.memref_slice %arg3[%156, %c0_i32_106] : memref<64x128xf32, #tpu.memory_space<any>> -> memref<1x128xf32, #tpu.memory_space<any>>
        %c0_i32_107 = arith.constant 0 : i32
        %158 = tpu.memref_slice %arg5[%149, %c0_i32_103, %c0_i32_107] : memref<2x8x128xf32, #tpu.memory_space<vmem>> -> memref<1x1x128xf32, #tpu.memory_space<vmem>>
        %159 = tpu.memref_squeeze %158 : memref<1x1x128xf32, #tpu.memory_space<vmem>> -> memref<1x128xf32, #tpu.memory_space<vmem>>
        %160 = tpu.memref_slice %arg6[%149] : memref<2x!tpu.dma_semaphore, #tpu.memory_space<semaphore_mem>> -> memref<1x!tpu.dma_semaphore, #tpu.memory_space<semaphore_mem>>
        %161 = tpu.memref_squeeze %160 : memref<1x!tpu.dma_semaphore, #tpu.memory_space<semaphore_mem>> -> memref<!tpu.dma_semaphore, #tpu.memory_space<semaphore_mem>>
        tpu.enqueue_dma source(%157 : memref<1x128xf32, #tpu.memory_space<any>>) target(%159 : memref<1x128xf32, #tpu.memory_space<vmem>>) target_semaphore(%161 : memref<!tpu.dma_semaphore, #tpu.memory_space<semaphore_mem>>)
        %c1_i32_108 = arith.constant 1 : i32
        %162 = arith.addi %151, %c1_i32_108 : i32
        %163 = arith.index_cast %162 : i32 to index
        %164 = memref.load %arg1[%163] : memref<48xi32, #tpu.memory_space<smem>>
        %c0_i32_109 = arith.constant 0 : i32
        %165 = arith.maxsi %164, %c0_i32_109 : i32
        %c63_i32_110 = arith.constant 63 : i32
        %166 = arith.minsi %165, %c63_i32_110 : i32
        %c0_i32_111 = arith.constant 0 : i32
        %167 = tpu.memref_slice %arg3[%166, %c0_i32_111] : memref<64x128xf32, #tpu.memory_space<any>> -> memref<1x128xf32, #tpu.memory_space<any>>
        %c0_i32_112 = arith.constant 0 : i32
        %168 = tpu.memref_slice %arg5[%149, %c1_i32_108, %c0_i32_112] : memref<2x8x128xf32, #tpu.memory_space<vmem>> -> memref<1x1x128xf32, #tpu.memory_space<vmem>>
        %169 = tpu.memref_squeeze %168 : memref<1x1x128xf32, #tpu.memory_space<vmem>> -> memref<1x128xf32, #tpu.memory_space<vmem>>
        %170 = tpu.memref_slice %arg6[%149] : memref<2x!tpu.dma_semaphore, #tpu.memory_space<semaphore_mem>> -> memref<1x!tpu.dma_semaphore, #tpu.memory_space<semaphore_mem>>
        %171 = tpu.memref_squeeze %170 : memref<1x!tpu.dma_semaphore, #tpu.memory_space<semaphore_mem>> -> memref<!tpu.dma_semaphore, #tpu.memory_space<semaphore_mem>>
        tpu.enqueue_dma source(%167 : memref<1x128xf32, #tpu.memory_space<any>>) target(%169 : memref<1x128xf32, #tpu.memory_space<vmem>>) target_semaphore(%171 : memref<!tpu.dma_semaphore, #tpu.memory_space<semaphore_mem>>)
        %c2_i32_113 = arith.constant 2 : i32
        %172 = arith.addi %151, %c2_i32_113 : i32
        %173 = arith.index_cast %172 : i32 to index
        %174 = memref.load %arg1[%173] : memref<48xi32, #tpu.memory_space<smem>>
        %c0_i32_114 = arith.constant 0 : i32
        %175 = arith.maxsi %174, %c0_i32_114 : i32
        %c63_i32_115 = arith.constant 63 : i32
        %176 = arith.minsi %175, %c63_i32_115 : i32
        %c0_i32_116 = arith.constant 0 : i32
        %177 = tpu.memref_slice %arg3[%176, %c0_i32_116] : memref<64x128xf32, #tpu.memory_space<any>> -> memref<1x128xf32, #tpu.memory_space<any>>
        %c0_i32_117 = arith.constant 0 : i32
        %178 = tpu.memref_slice %arg5[%149, %c2_i32_113, %c0_i32_117] : memref<2x8x128xf32, #tpu.memory_space<vmem>> -> memref<1x1x128xf32, #tpu.memory_space<vmem>>
        %179 = tpu.memref_squeeze %178 : memref<1x1x128xf32, #tpu.memory_space<vmem>> -> memref<1x128xf32, #tpu.memory_space<vmem>>
        %180 = tpu.memref_slice %arg6[%149] : memref<2x!tpu.dma_semaphore, #tpu.memory_space<semaphore_mem>> -> memref<1x!tpu.dma_semaphore, #tpu.memory_space<semaphore_mem>>
        %181 = tpu.memref_squeeze %180 : memref<1x!tpu.dma_semaphore, #tpu.memory_space<semaphore_mem>> -> memref<!tpu.dma_semaphore, #tpu.memory_space<semaphore_mem>>
        tpu.enqueue_dma source(%177 : memref<1x128xf32, #tpu.memory_space<any>>) target(%179 : memref<1x128xf32, #tpu.memory_space<vmem>>) target_semaphore(%181 : memref<!tpu.dma_semaphore, #tpu.memory_space<semaphore_mem>>)
        %c3_i32_118 = arith.constant 3 : i32
        %182 = arith.addi %151, %c3_i32_118 : i32
        %183 = arith.index_cast %182 : i32 to index
        %184 = memref.load %arg1[%183] : memref<48xi32, #tpu.memory_space<smem>>
        %c0_i32_119 = arith.constant 0 : i32
        %185 = arith.maxsi %184, %c0_i32_119 : i32
        %c63_i32_120 = arith.constant 63 : i32
        %186 = arith.minsi %185, %c63_i32_120 : i32
        %c0_i32_121 = arith.constant 0 : i32
        %187 = tpu.memref_slice %arg3[%186, %c0_i32_121] : memref<64x128xf32, #tpu.memory_space<any>> -> memref<1x128xf32, #tpu.memory_space<any>>
        %c0_i32_122 = arith.constant 0 : i32
        %188 = tpu.memref_slice %arg5[%149, %c3_i32_118, %c0_i32_122] : memref<2x8x128xf32, #tpu.memory_space<vmem>> -> memref<1x1x128xf32, #tpu.memory_space<vmem>>
        %189 = tpu.memref_squeeze %188 : memref<1x1x128xf32, #tpu.memory_space<vmem>> -> memref<1x128xf32, #tpu.memory_space<vmem>>
        %190 = tpu.memref_slice %arg6[%149] : memref<2x!tpu.dma_semaphore, #tpu.memory_space<semaphore_mem>> -> memref<1x!tpu.dma_semaphore, #tpu.memory_space<semaphore_mem>>
        %191 = tpu.memref_squeeze %190 : memref<1x!tpu.dma_semaphore, #tpu.memory_space<semaphore_mem>> -> memref<!tpu.dma_semaphore, #tpu.memory_space<semaphore_mem>>
        tpu.enqueue_dma source(%187 : memref<1x128xf32, #tpu.memory_space<any>>) target(%189 : memref<1x128xf32, #tpu.memory_space<vmem>>) target_semaphore(%191 : memref<!tpu.dma_semaphore, #tpu.memory_space<semaphore_mem>>)
        %c4_i32_123 = arith.constant 4 : i32
        %192 = arith.addi %151, %c4_i32_123 : i32
        %193 = arith.index_cast %192 : i32 to index
        %194 = memref.load %arg1[%193] : memref<48xi32, #tpu.memory_space<smem>>
        %c0_i32_124 = arith.constant 0 : i32
        %195 = arith.maxsi %194, %c0_i32_124 : i32
        %c63_i32_125 = arith.constant 63 : i32
        %196 = arith.minsi %195, %c63_i32_125 : i32
        %c0_i32_126 = arith.constant 0 : i32
        %197 = tpu.memref_slice %arg3[%196, %c0_i32_126] : memref<64x128xf32, #tpu.memory_space<any>> -> memref<1x128xf32, #tpu.memory_space<any>>
        %c0_i32_127 = arith.constant 0 : i32
        %198 = tpu.memref_slice %arg5[%149, %c4_i32_123, %c0_i32_127] : memref<2x8x128xf32, #tpu.memory_space<vmem>> -> memref<1x1x128xf32, #tpu.memory_space<vmem>>
        %199 = tpu.memref_squeeze %198 : memref<1x1x128xf32, #tpu.memory_space<vmem>> -> memref<1x128xf32, #tpu.memory_space<vmem>>
        %200 = tpu.memref_slice %arg6[%149] : memref<2x!tpu.dma_semaphore, #tpu.memory_space<semaphore_mem>> -> memref<1x!tpu.dma_semaphore, #tpu.memory_space<semaphore_mem>>
        %201 = tpu.memref_squeeze %200 : memref<1x!tpu.dma_semaphore, #tpu.memory_space<semaphore_mem>> -> memref<!tpu.dma_semaphore, #tpu.memory_space<semaphore_mem>>
        tpu.enqueue_dma source(%197 : memref<1x128xf32, #tpu.memory_space<any>>) target(%199 : memref<1x128xf32, #tpu.memory_space<vmem>>) target_semaphore(%201 : memref<!tpu.dma_semaphore, #tpu.memory_space<semaphore_mem>>)
        %c5_i32_128 = arith.constant 5 : i32
        %202 = arith.addi %151, %c5_i32_128 : i32
        %203 = arith.index_cast %202 : i32 to index
        %204 = memref.load %arg1[%203] : memref<48xi32, #tpu.memory_space<smem>>
        %c0_i32_129 = arith.constant 0 : i32
        %205 = arith.maxsi %204, %c0_i32_129 : i32
        %c63_i32_130 = arith.constant 63 : i32
        %206 = arith.minsi %205, %c63_i32_130 : i32
        %c0_i32_131 = arith.constant 0 : i32
        %207 = tpu.memref_slice %arg3[%206, %c0_i32_131] : memref<64x128xf32, #tpu.memory_space<any>> -> memref<1x128xf32, #tpu.memory_space<any>>
        %c0_i32_132 = arith.constant 0 : i32
        %208 = tpu.memref_slice %arg5[%149, %c5_i32_128, %c0_i32_132] : memref<2x8x128xf32, #tpu.memory_space<vmem>> -> memref<1x1x128xf32, #tpu.memory_space<vmem>>
        %209 = tpu.memref_squeeze %208 : memref<1x1x128xf32, #tpu.memory_space<vmem>> -> memref<1x128xf32, #tpu.memory_space<vmem>>
        %210 = tpu.memref_slice %arg6[%149] : memref<2x!tpu.dma_semaphore, #tpu.memory_space<semaphore_mem>> -> memref<1x!tpu.dma_semaphore, #tpu.memory_space<semaphore_mem>>
        %211 = tpu.memref_squeeze %210 : memref<1x!tpu.dma_semaphore, #tpu.memory_space<semaphore_mem>> -> memref<!tpu.dma_semaphore, #tpu.memory_space<semaphore_mem>>
        tpu.enqueue_dma source(%207 : memref<1x128xf32, #tpu.memory_space<any>>) target(%209 : memref<1x128xf32, #tpu.memory_space<vmem>>) target_semaphore(%211 : memref<!tpu.dma_semaphore, #tpu.memory_space<semaphore_mem>>)
        %c6_i32_133 = arith.constant 6 : i32
        %212 = arith.addi %151, %c6_i32_133 : i32
        %213 = arith.index_cast %212 : i32 to index
        %214 = memref.load %arg1[%213] : memref<48xi32, #tpu.memory_space<smem>>
        %c0_i32_134 = arith.constant 0 : i32
        %215 = arith.maxsi %214, %c0_i32_134 : i32
        %c63_i32_135 = arith.constant 63 : i32
        %216 = arith.minsi %215, %c63_i32_135 : i32
        %c0_i32_136 = arith.constant 0 : i32
        %217 = tpu.memref_slice %arg3[%216, %c0_i32_136] : memref<64x128xf32, #tpu.memory_space<any>> -> memref<1x128xf32, #tpu.memory_space<any>>
        %c0_i32_137 = arith.constant 0 : i32
        %218 = tpu.memref_slice %arg5[%149, %c6_i32_133, %c0_i32_137] : memref<2x8x128xf32, #tpu.memory_space<vmem>> -> memref<1x1x128xf32, #tpu.memory_space<vmem>>
        %219 = tpu.memref_squeeze %218 : memref<1x1x128xf32, #tpu.memory_space<vmem>> -> memref<1x128xf32, #tpu.memory_space<vmem>>
        %220 = tpu.memref_slice %arg6[%149] : memref<2x!tpu.dma_semaphore, #tpu.memory_space<semaphore_mem>> -> memref<1x!tpu.dma_semaphore, #tpu.memory_space<semaphore_mem>>
        %221 = tpu.memref_squeeze %220 : memref<1x!tpu.dma_semaphore, #tpu.memory_space<semaphore_mem>> -> memref<!tpu.dma_semaphore, #tpu.memory_space<semaphore_mem>>
        tpu.enqueue_dma source(%217 : memref<1x128xf32, #tpu.memory_space<any>>) target(%219 : memref<1x128xf32, #tpu.memory_space<vmem>>) target_semaphore(%221 : memref<!tpu.dma_semaphore, #tpu.memory_space<semaphore_mem>>)
        %c7_i32_138 = arith.constant 7 : i32
        %222 = arith.addi %151, %c7_i32_138 : i32
        %223 = arith.index_cast %222 : i32 to index
        %224 = memref.load %arg1[%223] : memref<48xi32, #tpu.memory_space<smem>>
        %c0_i32_139 = arith.constant 0 : i32
        %225 = arith.maxsi %224, %c0_i32_139 : i32
        %c63_i32_140 = arith.constant 63 : i32
        %226 = arith.minsi %225, %c63_i32_140 : i32
        %c0_i32_141 = arith.constant 0 : i32
        %227 = tpu.memref_slice %arg3[%226, %c0_i32_141] : memref<64x128xf32, #tpu.memory_space<any>> -> memref<1x128xf32, #tpu.memory_space<any>>
        %c0_i32_142 = arith.constant 0 : i32
        %228 = tpu.memref_slice %arg5[%149, %c7_i32_138, %c0_i32_142] : memref<2x8x128xf32, #tpu.memory_space<vmem>> -> memref<1x1x128xf32, #tpu.memory_space<vmem>>
        %229 = tpu.memref_squeeze %228 : memref<1x1x128xf32, #tpu.memory_space<vmem>> -> memref<1x128xf32, #tpu.memory_space<vmem>>
        %230 = tpu.memref_slice %arg6[%149] : memref<2x!tpu.dma_semaphore, #tpu.memory_space<semaphore_mem>> -> memref<1x!tpu.dma_semaphore, #tpu.memory_space<semaphore_mem>>
        %231 = tpu.memref_squeeze %230 : memref<1x!tpu.dma_semaphore, #tpu.memory_space<semaphore_mem>> -> memref<!tpu.dma_semaphore, #tpu.memory_space<semaphore_mem>>
        tpu.enqueue_dma source(%227 : memref<1x128xf32, #tpu.memory_space<any>>) target(%229 : memref<1x128xf32, #tpu.memory_space<vmem>>) target_semaphore(%231 : memref<!tpu.dma_semaphore, #tpu.memory_space<semaphore_mem>>)
        %c8_i32_143 = arith.constant 8 : i32
      } else {
      }
      %c0_i32_61 = arith.constant 0 : i32
      %c0_i32_62 = arith.constant 0 : i32
      %c0_i32_63 = arith.constant 0 : i32
      %97 = tpu.memref_slice %arg3[%c0_i32_62, %c0_i32_63] : memref<64x128xf32, #tpu.memory_space<any>> -> memref<1x128xf32, #tpu.memory_space<any>>
      %c0_i32_64 = arith.constant 0 : i32
      %98 = tpu.memref_slice %arg5[%92, %c0_i32_61, %c0_i32_64] : memref<2x8x128xf32, #tpu.memory_space<vmem>> -> memref<1x1x128xf32, #tpu.memory_space<vmem>>
      %99 = tpu.memref_squeeze %98 : memref<1x1x128xf32, #tpu.memory_space<vmem>> -> memref<1x128xf32, #tpu.memory_space<vmem>>
      %100 = tpu.memref_slice %arg6[%92] : memref<2x!tpu.dma_semaphore, #tpu.memory_space<semaphore_mem>> -> memref<1x!tpu.dma_semaphore, #tpu.memory_space<semaphore_mem>>
      %101 = tpu.memref_squeeze %100 : memref<1x!tpu.dma_semaphore, #tpu.memory_space<semaphore_mem>> -> memref<!tpu.dma_semaphore, #tpu.memory_space<semaphore_mem>>
      tpu.wait_dma2 semaphore(%101 : memref<!tpu.dma_semaphore, #tpu.memory_space<semaphore_mem>>) src(%97 : memref<1x128xf32, #tpu.memory_space<any>>) dst(%99 : memref<1x128xf32, #tpu.memory_space<vmem>>)
      %c1_i32_65 = arith.constant 1 : i32
      %c0_i32_66 = arith.constant 0 : i32
      %c0_i32_67 = arith.constant 0 : i32
      %102 = tpu.memref_slice %arg3[%c0_i32_66, %c0_i32_67] : memref<64x128xf32, #tpu.memory_space<any>> -> memref<1x128xf32, #tpu.memory_space<any>>
      %c0_i32_68 = arith.constant 0 : i32
      %103 = tpu.memref_slice %arg5[%92, %c1_i32_65, %c0_i32_68] : memref<2x8x128xf32, #tpu.memory_space<vmem>> -> memref<1x1x128xf32, #tpu.memory_space<vmem>>
      %104 = tpu.memref_squeeze %103 : memref<1x1x128xf32, #tpu.memory_space<vmem>> -> memref<1x128xf32, #tpu.memory_space<vmem>>
      %105 = tpu.memref_slice %arg6[%92] : memref<2x!tpu.dma_semaphore, #tpu.memory_space<semaphore_mem>> -> memref<1x!tpu.dma_semaphore, #tpu.memory_space<semaphore_mem>>
      %106 = tpu.memref_squeeze %105 : memref<1x!tpu.dma_semaphore, #tpu.memory_space<semaphore_mem>> -> memref<!tpu.dma_semaphore, #tpu.memory_space<semaphore_mem>>
      tpu.wait_dma2 semaphore(%106 : memref<!tpu.dma_semaphore, #tpu.memory_space<semaphore_mem>>) src(%102 : memref<1x128xf32, #tpu.memory_space<any>>) dst(%104 : memref<1x128xf32, #tpu.memory_space<vmem>>)
      %c2_i32_69 = arith.constant 2 : i32
      %c0_i32_70 = arith.constant 0 : i32
      %c0_i32_71 = arith.constant 0 : i32
      %107 = tpu.memref_slice %arg3[%c0_i32_70, %c0_i32_71] : memref<64x128xf32, #tpu.memory_space<any>> -> memref<1x128xf32, #tpu.memory_space<any>>
      %c0_i32_72 = arith.constant 0 : i32
      %108 = tpu.memref_slice %arg5[%92, %c2_i32_69, %c0_i32_72] : memref<2x8x128xf32, #tpu.memory_space<vmem>> -> memref<1x1x128xf32, #tpu.memory_space<vmem>>
      %109 = tpu.memref_squeeze %108 : memref<1x1x128xf32, #tpu.memory_space<vmem>> -> memref<1x128xf32, #tpu.memory_space<vmem>>
      %110 = tpu.memref_slice %arg6[%92] : memref<2x!tpu.dma_semaphore, #tpu.memory_space<semaphore_mem>> -> memref<1x!tpu.dma_semaphore, #tpu.memory_space<semaphore_mem>>
      %111 = tpu.memref_squeeze %110 : memref<1x!tpu.dma_semaphore, #tpu.memory_space<semaphore_mem>> -> memref<!tpu.dma_semaphore, #tpu.memory_space<semaphore_mem>>
      tpu.wait_dma2 semaphore(%111 : memref<!tpu.dma_semaphore, #tpu.memory_space<semaphore_mem>>) src(%107 : memref<1x128xf32, #tpu.memory_space<any>>) dst(%109 : memref<1x128xf32, #tpu.memory_space<vmem>>)
      %c3_i32_73 = arith.constant 3 : i32
      %c0_i32_74 = arith.constant 0 : i32
      %c0_i32_75 = arith.constant 0 : i32
      %112 = tpu.memref_slice %arg3[%c0_i32_74, %c0_i32_75] : memref<64x128xf32, #tpu.memory_space<any>> -> memref<1x128xf32, #tpu.memory_space<any>>
      %c0_i32_76 = arith.constant 0 : i32
      %113 = tpu.memref_slice %arg5[%92, %c3_i32_73, %c0_i32_76] : memref<2x8x128xf32, #tpu.memory_space<vmem>> -> memref<1x1x128xf32, #tpu.memory_space<vmem>>
      %114 = tpu.memref_squeeze %113 : memref<1x1x128xf32, #tpu.memory_space<vmem>> -> memref<1x128xf32, #tpu.memory_space<vmem>>
      %115 = tpu.memref_slice %arg6[%92] : memref<2x!tpu.dma_semaphore, #tpu.memory_space<semaphore_mem>> -> memref<1x!tpu.dma_semaphore, #tpu.memory_space<semaphore_mem>>
      %116 = tpu.memref_squeeze %115 : memref<1x!tpu.dma_semaphore, #tpu.memory_space<semaphore_mem>> -> memref<!tpu.dma_semaphore, #tpu.memory_space<semaphore_mem>>
      tpu.wait_dma2 semaphore(%116 : memref<!tpu.dma_semaphore, #tpu.memory_space<semaphore_mem>>) src(%112 : memref<1x128xf32, #tpu.memory_space<any>>) dst(%114 : memref<1x128xf32, #tpu.memory_space<vmem>>)
      %c4_i32_77 = arith.constant 4 : i32
      %c0_i32_78 = arith.constant 0 : i32
      %c0_i32_79 = arith.constant 0 : i32
      %117 = tpu.memref_slice %arg3[%c0_i32_78, %c0_i32_79] : memref<64x128xf32, #tpu.memory_space<any>> -> memref<1x128xf32, #tpu.memory_space<any>>
      %c0_i32_80 = arith.constant 0 : i32
      %118 = tpu.memref_slice %arg5[%92, %c4_i32_77, %c0_i32_80] : memref<2x8x128xf32, #tpu.memory_space<vmem>> -> memref<1x1x128xf32, #tpu.memory_space<vmem>>
      %119 = tpu.memref_squeeze %118 : memref<1x1x128xf32, #tpu.memory_space<vmem>> -> memref<1x128xf32, #tpu.memory_space<vmem>>
      %120 = tpu.memref_slice %arg6[%92] : memref<2x!tpu.dma_semaphore, #tpu.memory_space<semaphore_mem>> -> memref<1x!tpu.dma_semaphore, #tpu.memory_space<semaphore_mem>>
      %121 = tpu.memref_squeeze %120 : memref<1x!tpu.dma_semaphore, #tpu.memory_space<semaphore_mem>> -> memref<!tpu.dma_semaphore, #tpu.memory_space<semaphore_mem>>
      tpu.wait_dma2 semaphore(%121 : memref<!tpu.dma_semaphore, #tpu.memory_space<semaphore_mem>>) src(%117 : memref<1x128xf32, #tpu.memory_space<any>>) dst(%119 : memref<1x128xf32, #tpu.memory_space<vmem>>)
      %c5_i32_81 = arith.constant 5 : i32
      %c0_i32_82 = arith.constant 0 : i32
      %c0_i32_83 = arith.constant 0 : i32
      %122 = tpu.memref_slice %arg3[%c0_i32_82, %c0_i32_83] : memref<64x128xf32, #tpu.memory_space<any>> -> memref<1x128xf32, #tpu.memory_space<any>>
      %c0_i32_84 = arith.constant 0 : i32
      %123 = tpu.memref_slice %arg5[%92, %c5_i32_81, %c0_i32_84] : memref<2x8x128xf32, #tpu.memory_space<vmem>> -> memref<1x1x128xf32, #tpu.memory_space<vmem>>
      %124 = tpu.memref_squeeze %123 : memref<1x1x128xf32, #tpu.memory_space<vmem>> -> memref<1x128xf32, #tpu.memory_space<vmem>>
      %125 = tpu.memref_slice %arg6[%92] : memref<2x!tpu.dma_semaphore, #tpu.memory_space<semaphore_mem>> -> memref<1x!tpu.dma_semaphore, #tpu.memory_space<semaphore_mem>>
      %126 = tpu.memref_squeeze %125 : memref<1x!tpu.dma_semaphore, #tpu.memory_space<semaphore_mem>> -> memref<!tpu.dma_semaphore, #tpu.memory_space<semaphore_mem>>
      tpu.wait_dma2 semaphore(%126 : memref<!tpu.dma_semaphore, #tpu.memory_space<semaphore_mem>>) src(%122 : memref<1x128xf32, #tpu.memory_space<any>>) dst(%124 : memref<1x128xf32, #tpu.memory_space<vmem>>)
      %c6_i32_85 = arith.constant 6 : i32
      %c0_i32_86 = arith.constant 0 : i32
      %c0_i32_87 = arith.constant 0 : i32
      %127 = tpu.memref_slice %arg3[%c0_i32_86, %c0_i32_87] : memref<64x128xf32, #tpu.memory_space<any>> -> memref<1x128xf32, #tpu.memory_space<any>>
      %c0_i32_88 = arith.constant 0 : i32
      %128 = tpu.memref_slice %arg5[%92, %c6_i32_85, %c0_i32_88] : memref<2x8x128xf32, #tpu.memory_space<vmem>> -> memref<1x1x128xf32, #tpu.memory_space<vmem>>
      %129 = tpu.memref_squeeze %128 : memref<1x1x128xf32, #tpu.memory_space<vmem>> -> memref<1x128xf32, #tpu.memory_space<vmem>>
      %130 = tpu.memref_slice %arg6[%92] : memref<2x!tpu.dma_semaphore, #tpu.memory_space<semaphore_mem>> -> memref<1x!tpu.dma_semaphore, #tpu.memory_space<semaphore_mem>>
      %131 = tpu.memref_squeeze %130 : memref<1x!tpu.dma_semaphore, #tpu.memory_space<semaphore_mem>> -> memref<!tpu.dma_semaphore, #tpu.memory_space<semaphore_mem>>
      tpu.wait_dma2 semaphore(%131 : memref<!tpu.dma_semaphore, #tpu.memory_space<semaphore_mem>>) src(%127 : memref<1x128xf32, #tpu.memory_space<any>>) dst(%129 : memref<1x128xf32, #tpu.memory_space<vmem>>)
      %c7_i32_89 = arith.constant 7 : i32
      %c0_i32_90 = arith.constant 0 : i32
      %c0_i32_91 = arith.constant 0 : i32
      %132 = tpu.memref_slice %arg3[%c0_i32_90, %c0_i32_91] : memref<64x128xf32, #tpu.memory_space<any>> -> memref<1x128xf32, #tpu.memory_space<any>>
      %c0_i32_92 = arith.constant 0 : i32
      %133 = tpu.memref_slice %arg5[%92, %c7_i32_89, %c0_i32_92] : memref<2x8x128xf32, #tpu.memory_space<vmem>> -> memref<1x1x128xf32, #tpu.memory_space<vmem>>
      %134 = tpu.memref_squeeze %133 : memref<1x1x128xf32, #tpu.memory_space<vmem>> -> memref<1x128xf32, #tpu.memory_space<vmem>>
      %135 = tpu.memref_slice %arg6[%92] : memref<2x!tpu.dma_semaphore, #tpu.memory_space<semaphore_mem>> -> memref<1x!tpu.dma_semaphore, #tpu.memory_space<semaphore_mem>>
      %136 = tpu.memref_squeeze %135 : memref<1x!tpu.dma_semaphore, #tpu.memory_space<semaphore_mem>> -> memref<!tpu.dma_semaphore, #tpu.memory_space<semaphore_mem>>
      tpu.wait_dma2 semaphore(%136 : memref<!tpu.dma_semaphore, #tpu.memory_space<semaphore_mem>>) src(%132 : memref<1x128xf32, #tpu.memory_space<any>>) dst(%134 : memref<1x128xf32, #tpu.memory_space<vmem>>)
      %c8_i32_93 = arith.constant 8 : i32
      %c8_i32_94 = arith.constant 8 : i32
      %137 = arith.muli %arg7, %c8_i32_94 : i32
      %138 = tpu.assume_multiple %137, 8 : i32
      %139 = arith.index_cast %138 : i32 to index
      %c0 = arith.constant 0 : index
      %140 = vector.load %arg2[%139, %c0] : memref<16x1xf32, #tpu.memory_space<vmem>>, vector<8x1xf32>
      %c0_i32_95 = arith.constant 0 : i32
      %c0_i32_96 = arith.constant 0 : i32
      %141 = tpu.memref_slice %arg5[%92, %c0_i32_95, %c0_i32_96] : memref<2x8x128xf32, #tpu.memory_space<vmem>> -> memref<1x8x128xf32, #tpu.memory_space<vmem>>
      %142 = tpu.memref_squeeze %141 : memref<1x8x128xf32, #tpu.memory_space<vmem>> -> memref<8x128xf32, #tpu.memory_space<vmem>>
      %c0_97 = arith.constant 0 : index
      %c0_98 = arith.constant 0 : index
      %143 = vector.load %142[%c0_97, %c0_98] : memref<8x128xf32, #tpu.memory_space<vmem>>, vector<8x128xf32>
      %144 = vector.broadcast %140 : vector<8x1xf32> to vector<8x128xf32>
      %145 = arith.mulf %143, %144 : vector<8x128xf32>
      %146 = arith.index_cast %138 : i32 to index
      %c0_99 = arith.constant 0 : index
      %147 = vector.load %arg4[%146, %c0_99] : memref<16x128xf32, #tpu.memory_space<vmem>>, vector<8x128xf32>
      tpu.vector_store %arg4[%146, %c0_99], %145 {strides = array<i32>} : memref<16x128xf32, #tpu.memory_space<vmem>>, vector<8x128xf32>,
    }
    %c2_i32_51 = arith.constant 2 : i32
    return
  }
  func.func @transform_0(%arg0: i32, %arg1: memref<48xi32, #tpu.memory_space<smem>>) -> (i32, i32) {
    %c0_i32 = arith.constant 0 : i32
    %c0_i32_0 = arith.constant 0 : i32
    return %arg0, %c0_i32 : i32, i32
  }
  func.func @transform_2(%arg0: i32, %arg1: memref<48xi32, #tpu.memory_space<smem>>) -> (i32, i32) {
    %c0_i32 = arith.constant 0 : i32
    %c0_i32_0 = arith.constant 0 : i32
    return %arg0, %c0_i32 : i32, i32
  }
}

</mosaic_0001>

<bundles_post_ra>
// kernel: tpu_custom_call.1
= control target key start
LH: loop header
LB: loop body
LE: loop exit
PB: predicated region body
PF: predicated region fallthrough
CT: control target
= control target key end

     0   :  { %s1982_s0 = inlined_call_operand.vmem [shape: s32[48], index: 0, kind: input, shape index: {}]   ;;  %s1983_s1 = inlined_call_operand.vmem [shape: f32[48,1], index: 1, kind: input, shape index: {}]   ;;  %s1984_s2 = inlined_call_operand.hbm [shape: f32[64,128], index: 2, kind: input, shape index: {}]   ;;  %s1985_s3 = inlined_call_operand.hbm [shape: f32[48,128], index: 3, kind: output, shape index: {}]  }
   0x1   :  { %1997 = sst [smem:[#allocation61_spill]] %s1983_s1  ;;  %s8_s14 = sshll.u32 %s1982_s0, 4  ;;  %s9_s14 = int_to_ptr.vmem [resolvable:$true] %s8_s14 }
   0x2   :  { %1998 = sst [smem:[#allocation62_spill]] %s1985_s3  ;;  %s915_s15 = scalar_lea.vmem %s9_s14, 16 }
   0x3   :  { %p916_p0 = scmp.ne.s32.totalorder %s9_s14, %s915_s15  ;;  %p920_p1 = scmp.lt.s32.totalorder %s9_s14, %s9_s14 }
   0x4   :  { %p921_p2 = scmp.lt.s32.totalorder %s915_s15, %s915_s15 }
   0x6   :  { %p922_p3 = por %p921_p2, %p920_p1 }
   0x8   :  { %p923_p4 = pnand %p922_p3, %p916_p0 }
   0xa   :  { %926 = shalt.err (!%p923_p4)  }
   0xb   :  { %s1385_s16 = smov [#allocation5]  }
   0xc   :  { %11 = dma.vmem_to_smem %s9_s14, 16, %s1385_s16, [#allocation4] }
   0xd   :  { %1357 = dma.done.wait [#allocation4], 16 }
   0xe   :  { %1358 = vsyncadd [#allocation4], 4294967280 }
   0xf   :  { %13 = sfence }
  0x10   :  { %14 = vsyncpa [#allocation7], 0 }
  0x11   :  { %16 = vsyncpa [#allocation7 + $0x1], 0  ;;  %s1421_s17 = smov 0   ;;  %s1423_s18 = smov 0  }
  0x12   :  { %s1425_s0 = smov 0   ;;  %s1427_s19 = smov 0  }
  0x13 LB: > { %1999 = sst [smem:[#allocation53_spill]] %s1367_s17  ;;  %s1442_s20 = sadd.s32 4294967295, %s1379_s19   ;;  %s1379_s19 = sphi %s1427_s19, %s2026_s19   ;;  %s1375_s0 = sphi %s1425_s0, %s2028_s0   ;;  %s1371_s18 = sphi %s1423_s18, %s2030_s18   ;;  %s1367_s17 = sphi %s1421_s17, %s2029_s17  }
  0x14   : > { %2000 = sst [smem:[#allocation54_spill]] %s1375_s0  ;;  %s668_s21 = sadd.s32 4294967294, %s1379_s19  }
  0x15   : > { %2001 = sst [smem:[#allocation55_spill]] %s1379_s19  ;;  %s1446_s22 = sadd.s32 1, %s1379_s19  }
  0x16   : > { %2002 = sst [smem:[#allocation56_spill]] %s1446_s22  ;;  %s55_s23 = sadd.s32 1, %s1375_s0 }
  0x17   : > { %s52_s24 = ssub.s32 %s1379_s19, %s1446_s22  ;;  %p65_p5 = scmp.ne.s32.totalorder %s1375_s0, %s1371_s18 }
  0x18   : > { %p53_p6 = scmp.eq.s32.totalorder %s52_s24, 0  ;;  %p66_p7 = scmp.eq.s32.totalorder %s1442_s20, 2 }
  0x19   : > { %p71_p8 = scmp.ne.s32.totalorder %s1371_s18, %s1367_s17  ;;  %p72_p9 = scmp.eq.s32.totalorder %s668_s21, 2 }
  0x1a   : > { %s1457_s25 = scalar_select %p53_p6, %s1375_s0, %s55_s23  }
  0x1b   : > { %p1459_p10 = por %p66_p7, %p65_p5  ;;  %p1463_p11 = por %p72_p9, %p71_p8 }
  0x1c   : > { %2003 = sst [smem:[#allocation57_spill]] %s1457_s25  ;;  %p671_p12 = scmp.ge.s32.totalorder %s1379_s19, 1 }
  0x1d   : > { %s2004_s26 = scalar_select %p1459_p10, 1, 0 }
  0x1e   : > { %s2006_s27 = scalar_select %p1463_p11, 1, 0 }
  0x1f   : > { %2005 = sst [smem:[#allocation58_spill]] %s2004_s26  ;;  %p99_p13 = scmp.lt.s32.totalorder %s1379_s19, 4 }
  0x20   : > { %2007 = sst [smem:[#allocation59_spill]] %s2006_s27 }
  0x21   : > { %p100_p0 = pnand %p671_p12, %p99_p13 }
  0x23   : > { %103 = sbr.rel (%p100_p0) target bundleno = 617 (0x269), region = 24 }
  0x28   : > { %s1986_s28 = sand.u32 1, %s1371_s18   ;;  %s673_s29 = sshll.u32 %s1442_s20, 1 }
  0x29   : > { %s1473_s30 = sshll.u32 %s1986_s28, 4  ;;  %p120_p1 = scmp.lt.s32.totalorder %s673_s29, 5 }
  0x2a   : > { %s1476_s4 = sshll.u32 %s1442_s20, 4  ;;  %s1386_s7 = smov [#allocation2]  }
  0x2b   : > { %2008 = sst [smem:[#allocation60_spill]] %s1476_s4  ;;  %s2032_s29 = smov (!%p120_p1, %s673_s29), 5 }
  0x2c   : > { %s127_s5 = sld [smem:[#allocation5 + %s1476_s4]]  ;;  %s674_s6 = sshll.u32 %s2032_s29, 3 }
  0x2d   : > { %s141_s8 = sshll.u32 %s1386_s7, 4  ;;  %s2009_s1 = sld [smem:[#allocation61_spill]]  ;;  %s1484_s8 = int_to_ptr.vmem [resolvable:$true] %s141_s8 }
  0x2e   : > { %s145_s12 = sadd.s32 1, %s1476_s4  ;;  %s1387_s14 = smov [#allocation2 + $0x1]  }
  0x2f   : > { %s1487_s13 = sld [smem:[#allocation5 + %s145_s12]]  ;;  %s161_s15 = sshll.u32 %s1387_s14, 4  ;;  %s1489_s15 = int_to_ptr.vmem [resolvable:$true] %s161_s15 }
  0x30   : > { %s165_s16 = sadd.s32 2, %s1476_s4  ;;  %s1388_s23 = smov [#allocation2 + $0x2]  }
  0x31   : > { %s1492_s21 = sld [smem:[#allocation5 + %s165_s16]]  ;;  %s181_s24 = sshll.u32 %s1388_s23, 4  ;;  %s1497_s24 = int_to_ptr.vmem [resolvable:$true] %s181_s24 }
  0x32   : > { %p128_p2 = scmp.gt.s32.totalorder %s127_s5, 0  ;;  %p676_p3 = scmp.lt.s32.totalorder %s127_s5, 63 }
  0x33   : > { %s1482_s11 = scalar_lea.vmem %s2009_s1, %s674_s6  ;;  %s185_s29 = sadd.s32 3, %s1476_s4 }
  0x34   : > { %s2034_s5 = smov (!%p128_p2, %s127_s5), 0  ;;  %s1506_s28 = scalar_lea.hbm %s1984_s2, 1024 }
  0x35   : > { %s2036_s5 = smov (!%p676_p3, %s2034_s5), 63  ;;  %p147_p4 = scmp.gt.s32.totalorder %s1487_s13, 0 }
  0x36   : > { %s681_s6 = sshll.u32 %s2036_s5, 4 }
  0x37   : > { %s133_s10 = scalar_lea.hbm %s1984_s2, %s681_s6  ;;  %p167_p6 = scmp.gt.s32.totalorder %s1492_s21, 0 }
  0x38   : > { %s927_s12 = scalar_lea.hbm %s133_s10, 16  ;;  %p930_p8 = scmp.lt.s32.totalorder %s133_s10, %s1984_s2 }
  0x39   : > { %p928_p7 = scmp.ne.s32.totalorder %s133_s10, %s927_s12  ;;  %p931_p9 = scmp.lt.s32.totalorder %s1506_s28, %s927_s12 }
  0x3b   : > { %p932_p12 = por %p931_p9, %p930_p8 }
  0x3d   : > { %p933_p13 = pnand %p932_p12, %p928_p7 }
  0x3f   : > { %936 = shalt.err (!%p933_p13)  }
  0x40   : > { %s937_s5 = scalar_lea.vmem %s1484_s8, 16  ;;  %s1515_s6 = scalar_lea.vmem %s1484_s8, 256 }
  0x41   : > { %p938_p0 = scmp.ne.s32.totalorder %s1484_s8, %s937_s5  ;;  %p942_p1 = scmp.lt.s32.totalorder %s1484_s8, %s1484_s8 }
  0x42   : > { %p943_p2 = scmp.lt.s32.totalorder %s1515_s6, %s937_s5 }
  0x44   : > { %p944_p3 = por %p943_p2, %p942_p1 }
  0x46   : > { %p945_p5 = pnand %p944_p3, %p938_p0 }
  0x48   : > { %948 = shalt.err (!%p945_p5)  }
  0x49   : > { %144 = dma.hbm_to_vmem [thread:$0]  %s133_s10, 16, %s1484_s8, [#allocation3] }
  0x4a   : > { %s148_s1 = scalar_select %p147_p4, %s1487_s13, 0 }
  0x4b   : > { %s168_s7 = scalar_select %p167_p6, %s1492_s21, 0 }
  0x4c   : > { %p2010_p7 = scmp.lt.s32.totalorder %s1487_s13, 63  ;;  %p688_p8 = scmp.lt.s32.totalorder %s1492_s21, 63 }
  0x4d   : > { %s1530_s9 = sld [smem:[#allocation5 + %s185_s29]]  ;;  %s1389_s5 = smov [#allocation2 + $0x3]  }
  0x4e   : > { %s2038_s1 = smov (!%p2010_p7, %s148_s1), 63  ;;  %s201_s25 = sshll.u32 %s1389_s5, 4  ;;  %s1547_s25 = int_to_ptr.vmem [resolvable:$true] %s201_s25 }
  0x4f   : > { %s687_s12 = sshll.u32 %s2038_s1, 4 }
  0x50   : > { %s152_s23 = scalar_lea.hbm %s1984_s2, %s687_s12 }
  0x51   : > { %s949_s0 = scalar_lea.hbm %s152_s23, 16  ;;  %p952_p4 = scmp.lt.s32.totalorder %s152_s23, %s1984_s2 }
  0x52   : > { %p950_p5 = scmp.ne.s32.totalorder %s152_s23, %s949_s0  ;;  %p953_p9 = scmp.lt.s32.totalorder %s1506_s28, %s949_s0 }
  0x54   : > { %p954_p6 = por %p953_p9, %p952_p4 }
  0x56   : > { %p955_p12 = pnand %p954_p6, %p950_p5 }
  0x58   : > { %958 = shalt.err (!%p955_p12)  }
  0x59   : > { %s959_s13 = scalar_lea.vmem %s1489_s15, 16  ;;  %p964_p0 = scmp.lt.s32.totalorder %s1489_s15, %s1484_s8 }
  0x5a   : > { %p960_p13 = scmp.ne.s32.totalorder %s1489_s15, %s959_s13  ;;  %p965_p1 = scmp.lt.s32.totalorder %s1515_s6, %s959_s13 }
  0x5c   : > { %p966_p2 = por %p965_p1, %p964_p0 }
  0x5e   : > { %p967_p3 = pnand %p966_p2, %p960_p13 }
  0x60   : > { %970 = shalt.err (!%p967_p3)  }
  0x61   : > { %164 = dma.hbm_to_vmem [thread:$0]  %s152_s23, 16, %s1489_s15, [#allocation3] }
  0x62   : > { %s2040_s7 = smov (!%p688_p8, %s168_s7), 63  ;;  %s205_s0 = sadd.s32 4, %s1476_s4 }
  0x63   : > { %s693_s22 = sshll.u32 %s2040_s7, 4  ;;  %p187_p7 = scmp.gt.s32.totalorder %s1530_s9, 0 }
  0x64   : > { %s172_s12 = scalar_lea.hbm %s1984_s2, %s693_s22  ;;  %p694_p5 = scmp.lt.s32.totalorder %s1530_s9, 63 }
  0x65   : > { %s971_s14 = scalar_lea.hbm %s172_s12, 16  ;;  %p974_p9 = scmp.lt.s32.totalorder %s172_s12, %s1984_s2 }
  0x66   : > { %p972_p4 = scmp.ne.s32.totalorder %s172_s12, %s971_s14  ;;  %p975_p6 = scmp.lt.s32.totalorder %s1506_s28, %s971_s14 }
  0x68   : > { %p976_p12 = por %p975_p6, %p974_p9 }
  0x6a   : > { %p977_p13 = pnand %p976_p12, %p972_p4 }
  0x6c   : > { %980 = shalt.err (!%p977_p13)  }
  0x6d   : > { %s981_s15 = scalar_lea.vmem %s1497_s24, 16  ;;  %p986_p0 = scmp.lt.s32.totalorder %s1497_s24, %s1484_s8 }
  0x6e   : > { %p982_p8 = scmp.ne.s32.totalorder %s1497_s24, %s981_s15  ;;  %p987_p1 = scmp.lt.s32.totalorder %s1515_s6, %s981_s15 }
  0x70   : > { %p988_p2 = por %p987_p1, %p986_p0 }
  0x72   : > { %p989_p3 = pnand %p988_p2, %p982_p8 }
  0x74   : > { %992 = shalt.err (!%p989_p3)  }
  0x75   : > { %184 = dma.hbm_to_vmem [thread:$0]  %s172_s12, 16, %s1497_s24, [#allocation3] }
  0x76   : > { %s188_s21 = scalar_select %p187_p7, %s1530_s9, 0 }
  0x77   : > { %s1568_s7 = sld [smem:[#allocation5 + %s205_s0]]  ;;  %s1390_s23 = smov [#allocation2 + $0x4]  }
  0x78   : > { %s2042_s21 = smov (!%p694_p5, %s188_s21), 63  ;;  %s221_s10 = sshll.u32 %s1390_s23, 4  ;;  %s1573_s10 = int_to_ptr.vmem [resolvable:$true] %s221_s10 }
  0x79   : > { %s225_s13 = sadd.s32 5, %s1476_s4  ;;  %s699_s22 = sshll.u32 %s2042_s21, 4 }
  0x7a   : > { %s192_s14 = scalar_lea.hbm %s1984_s2, %s699_s22  ;;  %s1578_s16 = sld [smem:[#allocation5 + %s225_s13]] }
  0x7b   : > { %s993_s5 = scalar_lea.hbm %s192_s14, 16  ;;  %p996_p7 = scmp.lt.s32.totalorder %s192_s14, %s1984_s2 }
  0x7c   : > { %p994_p4 = scmp.ne.s32.totalorder %s192_s14, %s993_s5  ;;  %p997_p9 = scmp.lt.s32.totalorder %s1506_s28, %s993_s5 }
  0x7e   : > { %p998_p5 = por %p997_p9, %p996_p7 }
  0x80   : > { %p999_p6 = pnand %p998_p5, %p994_p4 }
  0x82   : > { %1002 = shalt.err (!%p999_p6)  }
  0x83   : > { %s1003_s9 = scalar_lea.vmem %s1547_s25, 16  ;;  %p1008_p13 = scmp.lt.s32.totalorder %s1547_s25, %s1484_s8 }
  0x84   : > { %p1004_p12 = scmp.ne.s32.totalorder %s1547_s25, %s1003_s9  ;;  %p1009_p8 = scmp.lt.s32.totalorder %s1515_s6, %s1003_s9 }
  0x86   : > { %p1010_p0 = por %p1009_p8, %p1008_p13 }
  0x88   : > { %p1011_p1 = pnand %p1010_p0, %p1004_p12 }
  0x8a   : > { %1014 = shalt.err (!%p1011_p1)  }
  0x8b   : > { %204 = dma.hbm_to_vmem [thread:$0]  %s192_s14, 16, %s1547_s25, [#allocation3] }
  0x8c   : > { %p207_p2 = scmp.gt.s32.totalorder %s1568_s7, 0  ;;  %p700_p3 = scmp.lt.s32.totalorder %s1568_s7, 63 }
  0x8d   : > { %s245_s0 = sadd.s32 6, %s1476_s4  ;;  %s1391_s15 = smov [#allocation2 + $0x5]  }
  0x8e   : > { %s2044_s7 = smov (!%p207_p2, %s1568_s7), 0  ;;  %s241_s21 = sshll.u32 %s1391_s15, 4  ;;  %s1598_s21 = int_to_ptr.vmem [resolvable:$true] %s241_s21 }
  0x8f   : > { %s1594_s23 = sld [smem:[#allocation5 + %s245_s0]]  ;;  %s2046_s7 = smov (!%p700_p3, %s2044_s7), 63 }
  0x90   : > { %p227_p4 = scmp.gt.s32.totalorder %s1578_s16, 0  ;;  %p706_p7 = scmp.lt.s32.totalorder %s1578_s16, 63 }
  0x91   : > { %s705_s13 = sshll.u32 %s2046_s7, 4 }
  0x92   : > { %s212_s1 = scalar_lea.hbm %s1984_s2, %s705_s13 }
  0x93   : > { %s1015_s25 = scalar_lea.hbm %s212_s1, 16  ;;  %p1018_p5 = scmp.lt.s32.totalorder %s212_s1, %s1984_s2 }
  0x94   : > { %p1016_p9 = scmp.ne.s32.totalorder %s212_s1, %s1015_s25  ;;  %p1019_p6 = scmp.lt.s32.totalorder %s1506_s28, %s1015_s25 }
  0x96   : > { %p1020_p12 = por %p1019_p6, %p1018_p5 }
  0x98   : > { %p1021_p13 = pnand %p1020_p12, %p1016_p9 }
  0x9a   : > { %1024 = shalt.err (!%p1021_p13)  }
  0x9b   : > { %s1025_s7 = scalar_lea.vmem %s1573_s10, 16  ;;  %p1030_p0 = scmp.lt.s32.totalorder %s1573_s10, %s1484_s8 }
  0x9c   : > { %p1026_p8 = scmp.ne.s32.totalorder %s1573_s10, %s1025_s7  ;;  %p1031_p1 = scmp.lt.s32.totalorder %s1515_s6, %s1025_s7 }
  0x9e   : > { %p1032_p2 = por %p1031_p1, %p1030_p0 }
  0xa0   : > { %p1033_p3 = pnand %p1032_p2, %p1026_p8 }
  0xa2   : > { %1036 = shalt.err (!%p1033_p3)  }
  0xa3   : > { %224 = dma.hbm_to_vmem [thread:$0]  %s212_s1, 16, %s1573_s10, [#allocation3] }
  0xa4   : > { %s228_s24 = scalar_select %p227_p4, %s1578_s16, 0 }
  0xa5   : > { %p247_p9 = scmp.gt.s32.totalorder %s1594_s23, 0  ;;  %p712_p5 = scmp.lt.s32.totalorder %s1594_s23, 63 }
  0xa6   : > { %s2048_s24 = smov (!%p706_p7, %s228_s24), 63  ;;  %s1392_s22 = smov [#allocation2 + $0x6]  }
  0xa7   : > { %s248_s12 = scalar_select %p247_p9, %s1594_s23, 0 }
  0xa8   : > { %s711_s9 = sshll.u32 %s2048_s24, 4  ;;  %s261_s29 = sshll.u32 %s1392_s22, 4  ;;  %s262_s29 = int_to_ptr.vmem [resolvable:$true] %s261_s29 }
  0xa9   : > { %s232_s13 = scalar_lea.hbm %s1984_s2, %s711_s9 }
  0xaa   : > { %s1037_s25 = scalar_lea.hbm %s232_s13, 16  ;;  %p1040_p12 = scmp.lt.s32.totalorder %s232_s13, %s1984_s2 }
  0xab   : > { %p1038_p6 = scmp.ne.s32.totalorder %s232_s13, %s1037_s25  ;;  %p1041_p13 = scmp.lt.s32.totalorder %s1506_s28, %s1037_s25 }
  0xad   : > { %p1042_p4 = por %p1041_p13, %p1040_p12 }
  0xaf   : > { %p1043_p8 = pnand %p1042_p4, %p1038_p6 }
  0xb1   : > { %1046 = shalt.err (!%p1043_p8)  }
  0xb2   : > { %s1047_s10 = scalar_lea.vmem %s1598_s21, 16  ;;  %p1052_p0 = scmp.lt.s32.totalorder %s1598_s21, %s1484_s8 }
  0xb3   : > { %p1048_p7 = scmp.ne.s32.totalorder %s1598_s21, %s1047_s10  ;;  %p1053_p1 = scmp.lt.s32.totalorder %s1515_s6, %s1047_s10 }
  0xb5   : > { %p1054_p2 = por %p1053_p1, %p1052_p0 }
  0xb7   : > { %p1055_p3 = pnand %p1054_p2, %p1048_p7 }
  0xb9   : > { %1058 = shalt.err (!%p1055_p3)  }
  0xba   : > { %244 = dma.hbm_to_vmem [thread:$0]  %s232_s13, 16, %s1598_s21, [#allocation3] }
  0xbb   : > { %s2050_s12 = smov (!%p712_p5, %s248_s12), 63  ;;  %s265_s16 = sadd.s32 7, %s1476_s4 }
  0xbc   : > { %s717_s1 = sshll.u32 %s2050_s12, 4  ;;  %s266_s7 = sld [smem:[#allocation5 + %s265_s16]] }
  0xbd   : > { %s252_s0 = scalar_lea.hbm %s1984_s2, %s717_s1 }
  0xbe   : > { %s1059_s15 = scalar_lea.hbm %s252_s0, 16  ;;  %p1062_p6 = scmp.lt.s32.totalorder %s252_s0, %s1984_s2 }
  0xbf   : > { %p1060_p9 = scmp.ne.s32.totalorder %s252_s0, %s1059_s15  ;;  %p1063_p12 = scmp.lt.s32.totalorder %s1506_s28, %s1059_s15 }
  0xc1   : > { %p1064_p13 = por %p1063_p12, %p1062_p6 }
  0xc3   : > { %p1065_p4 = pnand %p1064_p13, %p1060_p9 }
  0xc5   : > { %1068 = shalt.err (!%p1065_p4)  }
  0xc6   : > { %s1069_s21 = scalar_lea.vmem %s262_s29, 16  ;;  %p1074_p8 = scmp.lt.s32.totalorder %s262_s29, %s1484_s8 }
  0xc7   : > { %p1070_p5 = scmp.ne.s32.totalorder %s262_s29, %s1069_s21  ;;  %p1075_p7 = scmp.lt.s32.totalorder %s1515_s6, %s1069_s21 }
  0xc9   : > { %p1076_p0 = por %p1075_p7, %p1074_p8 }
  0xcb   : > { %p1077_p1 = pnand %p1076_p0, %p1070_p5 }
  0xcd   : > { %1080 = shalt.err (!%p1077_p1)  }
  0xce   : > { %264 = dma.hbm_to_vmem [thread:$0]  %s252_s0, 16, %s262_s29, [#allocation3] }
  0xcf   : > { %p267_p2 = scmp.gt.s32.totalorder %s266_s7, 0  ;;  %p718_p3 = scmp.lt.s32.totalorder %s266_s7, 63 }
  0xd0   : > { %s1393_s23 = smov [#allocation2 + $0x7]  }
  0xd1   : > { %s281_s12 = sshll.u32 %s1393_s23, 4  ;;  %s2052_s7 = smov (!%p267_p2, %s266_s7), 0  ;;  %s282_s12 = int_to_ptr.vmem [resolvable:$true] %s281_s12 }
  0xd2   : > { %s2054_s7 = smov (!%p718_p3, %s2052_s7), 63 }
  0xd3   : > { %s723_s13 = sshll.u32 %s2054_s7, 4 }
  0xd4   : > { %s272_s10 = scalar_lea.hbm %s1984_s2, %s723_s13 }
  0xd5   : > { %s1081_s16 = scalar_lea.hbm %s272_s10, 16  ;;  %p1084_p6 = scmp.lt.s32.totalorder %s272_s10, %s1984_s2 }
  0xd6   : > { %p1082_p9 = scmp.ne.s32.totalorder %s272_s10, %s1081_s16  ;;  %p1085_p12 = scmp.lt.s32.totalorder %s1506_s28, %s1081_s16 }
  0xd8   : > { %p1086_p13 = por %p1085_p12, %p1084_p6 }
  0xda   : > { %p1087_p4 = pnand %p1086_p13, %p1082_p9 }
  0xdc   : > { %1090 = shalt.err (!%p1087_p4)  }
  0xdd   : > { %s1091_s29 = scalar_lea.vmem %s282_s12, 16  ;;  %p1096_p8 = scmp.lt.s32.totalorder %s282_s12, %s1484_s8 }
  0xde   : > { %p1092_p5 = scmp.ne.s32.totalorder %s282_s12, %s1091_s29  ;;  %p1097_p7 = scmp.lt.s32.totalorder %s1515_s6, %s1091_s29 }
  0xe0   : > { %p1098_p0 = por %p1097_p7, %p1096_p8 }
  0xe2   : > { %p1099_p1 = pnand %p1098_p0, %p1092_p5 }
  0xe4   : > { %1102 = shalt.err (!%p1099_p1)  }
  0xe5   : > { %284 = dma.hbm_to_vmem [thread:$0]  %s272_s10, 16, %s282_s12, [#allocation3] }
  0xe6   : > { %s1656_s9 = smov 0  }
  0xe7 LB: >> { %s2011_s4 = sld [smem:[#allocation60_spill]]  ;;  %p291_p2 = scmp.lt.s32.totalorder %s1383_s9, 0  ;;  %s1383_s9 = sphi %s1656_s9, %s2016_s9  }
  0xe8   : >> { %s292_s0 = ssub.s32 0, %s1383_s9  ;;  %s1659_s22 = sadd.s32 1, %s1383_s9  }
  0xe9   : >> { %s724_s15 = smin.u32 %s1383_s9, %s292_s0  ;;  %s1662_s23 = sshll.u32 %s1383_s9, 3 }
  0xea   : >> { %s294_s25 = sand.u32 1, %s724_s15   ;;  %p860_p6 = scmp.lt.s32.totalorder %s1659_s22, 2 }
  0xeb   : >> { %s295_s21 = ssub.s32 0, %s294_s25  ;;  %s811_s13 = sadd.s32 8, %s1662_s23 }
  0xec   : >> { %s2056_s21 = smov (!%p291_p2, %s295_s21), %s294_s25 }
  0xed   : >> { %p726_p9 = scmp.lt.s32.totalorder %s2056_s21, 0  ;;  %s301_s12 = sadd.s32 2, %s2056_s21 }
  0xee   : >> { %s1669_s14 = sadd.s32 %s811_s13, %s2011_s4 }
  0xef   : >> { %s2058_s12 = smov (!%p726_p9, %s301_s12), %s2056_s21  ;;  %s332_s29 = sadd.s32 1, %s1669_s14 }
  0xf0   : >> { %s308_s5 = ssub.s32 1, %s2058_s12  ;;  %s2060_s29 = smov (!%p860_p6, %s332_s29), 0 }
  0xf1   : >> { %s830_s10 = scalar_select %p860_p6, [#allocation5], [#allocation42] }
  0xf2   : >> { %s831_s16 = scalar_select %p860_p6, %s1669_s14, 0 }
  0xf3   : >> { %s735_s1 = sshll.u32 %s308_s5, 3  ;;  %s1704_s17 = scalar_lea.sflag [#allocation3], %s308_s5 }
  0xf4   : >> { %s311_s24 = sld [smem:[%s830_s10 + %s831_s16]]  ;;  %s1678_s9 = scalar_lea.vmem [#allocation2], %s735_s1 }
  0xf5   : >> { %s328_s0 = sshll.u32 %s1678_s9, 4  ;;  %s596_s15 = scalar_lea.vmem %s1678_s9, 1 [#allocation2]  ;;  %s1686_s0 = int_to_ptr.vmem [resolvable:$true] %s328_s0 }
  0xf6   : >> { %s833_s25 = scalar_select %p860_p6, [#allocation5], [#allocation43] }
  0xf7   : >> { %s1688_s21 = sshll.u32 %s596_s15, 4  ;;  %s353_s10 = sadd.s32 2, %s1669_s14  ;;  %s350_s21 = int_to_ptr.vmem [resolvable:$true] %s1688_s21 }
  0xf8   : >> { %s1690_s13 = sld [smem:[%s833_s25 + %s2060_s29]]  ;;  %s2066_s10 = smov (!%p860_p6, %s353_s10), 0 }
  0xf9   : >> { %s1695_s16 = scalar_select %p860_p6, [#allocation5], [#allocation44] }
  0xfa   : >> { %p312_p12 = scmp.gt.s32.totalorder %s311_s24, 0  ;;  %p729_p13 = scmp.lt.s32.totalorder %s311_s24, 63 }
  0xfb   : >> { %s601_s7 = scalar_lea.vmem %s1678_s9, 2 [#allocation2] }
  0xfc   : >> { %s2062_s24 = smov (!%p312_p12, %s311_s24), 0 }
  0xfd   : >> { %s2064_s24 = smov (!%p729_p13, %s2062_s24), 63 }
  0xfe   : >> { %s734_s1 = sshll.u32 %s2064_s24, 4 }
  0xff   : >> { %s317_s27 = scalar_lea.hbm %s1984_s2, %s734_s1 }
 0x100   : >> { %s1103_s29 = scalar_lea.hbm %s317_s27, 16  ;;  %p1108_p0 = scmp.lt.s32.totalorder %s317_s27, %s1984_s2 }
 0x101   : >> { %p1104_p5 = scmp.ne.s32.totalorder %s317_s27, %s1103_s29  ;;  %p1109_p1 = scmp.lt.s32.totalorder %s1506_s28, %s1103_s29 }
 0x103   : >> { %p1105_p8 = pnand %p1104_p5, %p860_p6  ;;  %p1110_p2 = por %p1109_p1, %p1108_p0 }
 0x105   : >> { %p1106_p7 = pneg %p1105_p8 }
 0x107   : >> { %p1111_p9 = pnand %p1110_p2, %p1106_p7 }
 0x109   : >> { %1114 = shalt.err (!%p1111_p9)  }
 0x10a   : >> { %s1115_s4 = scalar_lea.vmem %s1686_s0, 16  ;;  %p1122_p8 = scmp.lt.s32.totalorder %s1686_s0, %s1484_s8 }
 0x10b   : >> { %p1116_p12 = scmp.ne.s32.totalorder %s1686_s0, %s1115_s4  ;;  %p1123_p3 = scmp.lt.s32.totalorder %s1515_s6, %s1115_s4 }
 0x10d   : >> { %p1117_p13 = pnand %p1116_p12, %p860_p6  ;;  %p1124_p4 = por %p1123_p3, %p1122_p8 }
 0x10f   : >> { %p1118_p5 = pneg %p1117_p13 }
 0x111   : >> { %p1125_p11 = pnand %p1124_p4, %p1118_p5 }
 0x113   : >> { %1128 = shalt.err (!%p1125_p11)  }
 0x114   : >> { %832 = dma.hbm_to_vmem [thread:$0]  (%p860_p6), %s317_s27, 16, %s1686_s0, %s1704_s17 }
 0x115   : >> { %p2012_p7 = scmp.gt.s32.totalorder %s1690_s13, 0  ;;  %p736_p0 = scmp.lt.s32.totalorder %s1690_s13, 63 }
 0x116   : >> { %s1728_s5 = sld [smem:[%s1695_s16 + %s2066_s10]]  ;;  %s370_s24 = sshll.u32 %s601_s7, 4  ;;  %s1732_s24 = int_to_ptr.vmem [resolvable:$true] %s370_s24 }
 0x117   : >> { %s335_s19 = scalar_select %p2012_p7, %s1690_s13, 0 }
 0x118   : >> { %s374_s1 = sadd.s32 3, %s1669_s14  ;;  %s606_s3 = scalar_lea.vmem %s1678_s9, 3 [#allocation2] }
 0x119   : >> { %s2068_s19 = smov (!%p736_p0, %s335_s19), 63 }
 0x11a   : >> { %s741_s15 = sshll.u32 %s2068_s19, 4 }
 0x11b   : >> { %s339_s4 = scalar_lea.hbm %s1984_s2, %s741_s15 }
 0x11c   : >> { %s1129_s26 = scalar_lea.hbm %s339_s4, 16  ;;  %p1134_p1 = scmp.lt.s32.totalorder %s339_s4, %s1984_s2 }
 0x11d   : >> { %p1130_p11 = scmp.ne.s32.totalorder %s339_s4, %s1129_s26  ;;  %p1135_p2 = scmp.lt.s32.totalorder %s1506_s28, %s1129_s26 }
 0x11f   : >> { %p1131_p3 = pnand %p1130_p11, %p860_p6  ;;  %p1136_p9 = por %p1135_p2, %p1134_p1 }
 0x121   : >> { %p1132_p4 = pneg %p1131_p3 }
 0x123   : >> { %p1137_p12 = pnand %p1136_p9, %p1132_p4 }
 0x125   : >> { %1140 = shalt.err (!%p1137_p12)  }
 0x126   : >> { %s1141_s7 = scalar_lea.vmem %s350_s21, 16  ;;  %p1148_p7 = scmp.lt.s32.totalorder %s350_s21, %s1484_s8 }
 0x127   : >> { %p1142_p13 = scmp.ne.s32.totalorder %s350_s21, %s1141_s7  ;;  %p1149_p0 = scmp.lt.s32.totalorder %s1515_s6, %s1141_s7 }
 0x129   : >> { %p1143_p5 = pnand %p1142_p13, %p860_p6  ;;  %p1150_p11 = por %p1149_p0, %p1148_p7 }
 0x12b   : >> { %p1144_p8 = pneg %p1143_p5 }
 0x12d   : >> { %p1151_p3 = pnand %p1150_p11, %p1144_p8 }
 0x12f   : >> { %1154 = shalt.err (!%p1151_p3)  }
 0x130   : >> { %835 = dma.hbm_to_vmem [thread:$0]  (%p860_p6), %s339_s4, 16, %s350_s21, %s1704_s17 }
 0x131   : >> { %p355_p4 = scmp.gt.s32.totalorder %s1728_s5, 0  ;;  %p743_p1 = scmp.lt.s32.totalorder %s1728_s5, 63 }
 0x132   : >> { %s839_s26 = scalar_select %p860_p6, [#allocation5], [#allocation45] }
 0x133   : >> { %s2070_s5 = smov (!%p355_p4, %s1728_s5), 0  ;;  %s2072_s1 = smov (!%p860_p6, %s374_s1), 0 }
 0x134   : >> { %s2074_s5 = smov (!%p743_p1, %s2070_s5), 63  ;;  %s1758_s13 = sld [smem:[%s839_s26 + %s2072_s1]] }
 0x135   : >> { %s1760_s10 = sshll.u32 %s606_s3, 4  ;;  %s748_s16 = sshll.u32 %s2074_s5, 4  ;;  %s392_s10 = int_to_ptr.vmem [resolvable:$true] %s1760_s10 }
 0x136   : >> { %s395_s19 = sadd.s32 4, %s1669_s14  ;;  %s360_s25 = scalar_lea.hbm %s1984_s2, %s748_s16 }
 0x137   : >> { %s611_s21 = scalar_lea.vmem %s1678_s9, 4 [#allocation2]  ;;  %s1155_s4 = scalar_lea.hbm %s360_s25, 16 }
 0x138   : >> { %p1156_p2 = scmp.ne.s32.totalorder %s360_s25, %s1155_s4  ;;  %p1160_p13 = scmp.lt.s32.totalorder %s360_s25, %s1984_s2 }
 0x139   : >> { %p1161_p5 = scmp.lt.s32.totalorder %s1506_s28, %s1155_s4 }
 0x13a   : >> { %p1157_p9 = pnand %p1156_p2, %p860_p6 }
 0x13b   : >> { %p1162_p8 = por %p1161_p5, %p1160_p13 }
 0x13c   : >> { %p1158_p12 = pneg %p1157_p9 }
 0x13e   : >> { %p1163_p7 = pnand %p1162_p8, %p1158_p12 }
 0x140   : >> { %1166 = shalt.err (!%p1163_p7)  }
 0x141   : >> { %s1167_s3 = scalar_lea.vmem %s1732_s24, 16  ;;  %p1174_p4 = scmp.lt.s32.totalorder %s1732_s24, %s1484_s8 }
 0x142   : >> { %p1168_p0 = scmp.ne.s32.totalorder %s1732_s24, %s1167_s3  ;;  %p1175_p1 = scmp.lt.s32.totalorder %s1515_s6, %s1167_s3 }
 0x144   : >> { %p1169_p11 = pnand %p1168_p0, %p860_p6  ;;  %p1176_p2 = por %p1175_p1, %p1174_p4 }
 0x146   : >> { %p1170_p3 = pneg %p1169_p11 }
 0x148   : >> { %p1177_p9 = pnand %p1176_p2, %p1170_p3 }
 0x14a   : >> { %1180 = shalt.err (!%p1177_p9)  }
 0x14b   : >> { %838 = dma.hbm_to_vmem [thread:$0]  (%p860_p6), %s360_s25, 16, %s1732_s24, %s1704_s17 }
 0x14c   : >> { %s842_s5 = scalar_select %p860_p6, [#allocation5], [#allocation46] }
 0x14d   : >> { %s2076_s19 = smov (!%p860_p6, %s395_s19), 0  ;;  %p376_p12 = scmp.gt.s32.totalorder %s1758_s13, 0 }
 0x14e   : >> { %p750_p13 = scmp.lt.s32.totalorder %s1758_s13, 63  ;;  %s1790_s1 = sld [smem:[%s842_s5 + %s2076_s19]] }
 0x14f   : >> { %s2078_s13 = smov (!%p376_p12, %s1758_s13), 0  ;;  %s1794_s7 = sshll.u32 %s611_s21, 4  ;;  %s413_s7 = int_to_ptr.vmem [resolvable:$true] %s1794_s7 }
 0x150   : >> { %s2080_s13 = smov (!%p750_p13, %s2078_s13), 63  ;;  %s416_s16 = sadd.s32 5, %s1669_s14 }
 0x151   : >> { %s1798_s26 = scalar_select %p860_p6, [#allocation5], [#allocation47] }
 0x152   : >> { %s755_s24 = sshll.u32 %s2080_s13, 4 }
 0x153   : >> { %s381_s25 = scalar_lea.hbm %s1984_s2, %s755_s24 }
 0x154   : >> { %s1181_s4 = scalar_lea.hbm %s381_s25, 16  ;;  %p1186_p11 = scmp.lt.s32.totalorder %s381_s25, %s1984_s2 }
 0x155   : >> { %p1182_p8 = scmp.ne.s32.totalorder %s381_s25, %s1181_s4  ;;  %p1187_p3 = scmp.lt.s32.totalorder %s1506_s28, %s1181_s4 }
 0x157   : >> { %p1183_p7 = pnand %p1182_p8, %p860_p6  ;;  %p1188_p4 = por %p1187_p3, %p1186_p11 }
 0x159   : >> { %p1184_p0 = pneg %p1183_p7 }
 0x15b   : >> { %p1189_p1 = pnand %p1188_p4, %p1184_p0 }
 0x15d   : >> { %1192 = shalt.err (!%p1189_p1)  }
 0x15e   : >> { %s1193_s13 = scalar_lea.vmem %s392_s10, 16  ;;  %p1200_p13 = scmp.lt.s32.totalorder %s392_s10, %s1484_s8 }
 0x15f   : >> { %p1194_p2 = scmp.ne.s32.totalorder %s392_s10, %s1193_s13  ;;  %p1201_p5 = scmp.lt.s32.totalorder %s1515_s6, %s1193_s13 }
 0x161   : >> { %p1195_p9 = pnand %p1194_p2, %p860_p6  ;;  %p1202_p8 = por %p1201_p5, %p1200_p13 }
 0x163   : >> { %p1196_p12 = pneg %p1195_p9 }
 0x165   : >> { %p1203_p7 = pnand %p1202_p8, %p1196_p12 }
 0x167   : >> { %1206 = shalt.err (!%p1203_p7)  }
 0x168   : >> { %841 = dma.hbm_to_vmem [thread:$0]  (%p860_p6), %s381_s25, 16, %s392_s10, %s1704_s17 }
 0x169   : >> { %p2013_p0 = scmp.gt.s32.totalorder %s1790_s1, 0  ;;  %p757_p11 = scmp.lt.s32.totalorder %s1790_s1, 63 }
 0x16a   : >> { %s616_s0 = scalar_lea.vmem %s1678_s9, 5 [#allocation2]  ;;  %s2082_s16 = smov (!%p860_p6, %s416_s16), 0 }
 0x16b   : >> { %s398_s21 = scalar_select %p2013_p0, %s1790_s1, 0 }
 0x16c   : >> { %s1827_s3 = sld [smem:[%s1798_s26 + %s2082_s16]]  ;;  %s433_s24 = sshll.u32 %s616_s0, 4  ;;  %s434_s24 = int_to_ptr.vmem [resolvable:$true] %s433_s24 }
 0x16d   : >> { %s2084_s21 = smov (!%p757_p11, %s398_s21), 63  ;;  %s437_s19 = sadd.s32 6, %s1669_s14 }
 0x16e   : >> { %s762_s5 = sshll.u32 %s2084_s21, 4 }
 0x16f   : >> { %s402_s4 = scalar_lea.hbm %s1984_s2, %s762_s5 }
 0x170   : >> { %s1207_s27 = scalar_lea.hbm %s402_s4, 16  ;;  %p1212_p1 = scmp.lt.s32.totalorder %s402_s4, %s1984_s2 }
 0x171   : >> { %p1208_p5 = scmp.ne.s32.totalorder %s402_s4, %s1207_s27  ;;  %p1213_p2 = scmp.lt.s32.totalorder %s1506_s28, %s1207_s27 }
 0x173   : >> { %p1209_p3 = pnand %p1208_p5, %p860_p6  ;;  %p1214_p9 = por %p1213_p2, %p1212_p1 }
 0x175   : >> { %p1210_p4 = pneg %p1209_p3 }
 0x177   : >> { %p1215_p12 = pnand %p1214_p9, %p1210_p4 }
 0x179   : >> { %1218 = shalt.err (!%p1215_p12)  }
 0x17a   : >> { %s1219_s26 = scalar_lea.vmem %s413_s7, 16  ;;  %p1226_p0 = scmp.lt.s32.totalorder %s413_s7, %s1484_s8 }
 0x17b   : >> { %p1220_p13 = scmp.ne.s32.totalorder %s413_s7, %s1219_s26  ;;  %p1227_p11 = scmp.lt.s32.totalorder %s1515_s6, %s1219_s26 }
 0x17d   : >> { %p1221_p8 = pnand %p1220_p13, %p860_p6  ;;  %p1228_p5 = por %p1227_p11, %p1226_p0 }
 0x17f   : >> { %p1222_p7 = pneg %p1221_p8 }
 0x181   : >> { %p1229_p3 = pnand %p1228_p5, %p1222_p7 }
 0x183   : >> { %1232 = shalt.err (!%p1229_p3)  }
 0x184   : >> { %844 = dma.hbm_to_vmem [thread:$0]  (%p860_p6), %s402_s4, 16, %s413_s7, %s1704_s17 }
 0x185   : >> { %s848_s16 = scalar_select %p860_p6, [#allocation5], [#allocation48] }
 0x186   : >> { %s2086_s19 = smov (!%p860_p6, %s437_s19), 0  ;;  %p418_p4 = scmp.gt.s32.totalorder %s1827_s3, 0 }
 0x187   : >> { %p764_p1 = scmp.lt.s32.totalorder %s1827_s3, 63  ;;  %s1852_s25 = sld [smem:[%s848_s16 + %s2086_s19]] }
 0x188   : >> { %s2088_s3 = smov (!%p418_p4, %s1827_s3), 0  ;;  %s621_s13 = scalar_lea.vmem %s1678_s9, 6 [#allocation2] }
 0x189   : >> { %s2090_s3 = smov (!%p764_p1, %s2088_s3), 63  ;;  %s458_s7 = sadd.s32 7, %s1669_s14 }
 0x18a   : >> { %s1858_s21 = scalar_select %p860_p6, [#allocation5], [#allocation49] }
 0x18b   : >> { %s769_s0 = sshll.u32 %s2090_s3, 4 }
 0x18c   : >> { %s423_s29 = scalar_lea.hbm %s1984_s2, %s769_s0 }
 0x18d   : >> { %s1233_s4 = scalar_lea.hbm %s423_s29, 16  ;;  %p1238_p8 = scmp.lt.s32.totalorder %s423_s29, %s1984_s2 }
 0x18e   : >> { %p1234_p9 = scmp.ne.s32.totalorder %s423_s29, %s1233_s4  ;;  %p1239_p7 = scmp.lt.s32.totalorder %s1506_s28, %s1233_s4 }
 0x190   : >> { %p1235_p12 = pnand %p1234_p9, %p860_p6  ;;  %p1240_p0 = por %p1239_p7, %p1238_p8 }
 0x192   : >> { %p1236_p13 = pneg %p1235_p12 }
 0x194   : >> { %p1241_p11 = pnand %p1240_p0, %p1236_p13 }
 0x196   : >> { %1244 = shalt.err (!%p1241_p11)  }
 0x197   : >> { %s1245_s3 = scalar_lea.vmem %s434_s24, 16  ;;  %p1252_p1 = scmp.lt.s32.totalorder %s434_s24, %s1484_s8 }
 0x198   : >> { %p1246_p5 = scmp.ne.s32.totalorder %s434_s24, %s1245_s3  ;;  %p1253_p2 = scmp.lt.s32.totalorder %s1515_s6, %s1245_s3 }
 0x19a   : >> { %p1247_p3 = pnand %p1246_p5, %p860_p6  ;;  %p1254_p9 = por %p1253_p2, %p1252_p1 }
 0x19c   : >> { %p1248_p4 = pneg %p1247_p3 }
 0x19e   : >> { %p1255_p12 = pnand %p1254_p9, %p1248_p4 }
 0x1a0   : >> { %1258 = shalt.err (!%p1255_p12)  }
 0x1a1   : >> { %847 = dma.hbm_to_vmem [thread:$0]  (%p860_p6), %s423_s29, 16, %s434_s24, %s1704_s17 }
 0x1a2   : >> { %p2014_p13 = scmp.gt.s32.totalorder %s1852_s25, 0  ;;  %p771_p8 = scmp.lt.s32.totalorder %s1852_s25, 63 }
 0x1a3   : >> { %s454_s10 = sshll.u32 %s621_s13, 4  ;;  %s2092_s7 = smov (!%p860_p6, %s458_s7), 0  ;;  %s455_s10 = int_to_ptr.vmem [resolvable:$true] %s454_s10 }
 0x1a4   : >> { %s440_s14 = scalar_select %p2014_p13, %s1852_s25, 0 }
 0x1a5   : >> { %s459_s1 = sld [smem:[%s1858_s21 + %s2092_s7]] }
 0x1a6   : >> { %s2094_s14 = smov (!%p771_p8, %s440_s14), 63 }
 0x1a7   : >> { %s776_s26 = sshll.u32 %s2094_s14, 4 }
 0x1a8   : >> { %s444_s5 = scalar_lea.hbm %s1984_s2, %s776_s26 }
 0x1a9   : >> { %s1259_s15 = scalar_lea.hbm %s444_s5, 16  ;;  %p1264_p11 = scmp.lt.s32.totalorder %s444_s5, %s1984_s2 }
 0x1aa   : >> { %p1260_p2 = scmp.ne.s32.totalorder %s444_s5, %s1259_s15  ;;  %p1265_p5 = scmp.lt.s32.totalorder %s1506_s28, %s1259_s15 }
 0x1ac   : >> { %p1261_p7 = pnand %p1260_p2, %p860_p6  ;;  %p1266_p3 = por %p1265_p5, %p1264_p11 }
 0x1ae   : >> { %p1262_p0 = pneg %p1261_p7 }
 0x1b0   : >> { %p1267_p4 = pnand %p1266_p3, %p1262_p0 }
 0x1b2   : >> { %1270 = shalt.err (!%p1267_p4)  }
 0x1b3   : >> { %s1271_s25 = scalar_lea.vmem %s455_s10, 16  ;;  %p1278_p13 = scmp.lt.s32.totalorder %s455_s10, %s1484_s8 }
 0x1b4   : >> { %p1272_p1 = scmp.ne.s32.totalorder %s455_s10, %s1271_s25  ;;  %p1279_p8 = scmp.lt.s32.totalorder %s1515_s6, %s1271_s25 }
 0x1b6   : >> { %p1273_p9 = pnand %p1272_p1, %p860_p6  ;;  %p1280_p2 = por %p1279_p8, %p1278_p13 }
 0x1b8   : >> { %p1274_p12 = pneg %p1273_p9 }
 0x1ba   : >> { %p1281_p7 = pnand %p1280_p2, %p1274_p12 }
 0x1bc   : >> { %1284 = shalt.err (!%p1281_p7)  }
 0x1bd   : >> { %850 = dma.hbm_to_vmem [thread:$0]  (%p860_p6), %s444_s5, 16, %s455_s10, %s1704_s17 }
 0x1be   : >> { %s626_s13 = scalar_lea.vmem %s1678_s9, 7 [#allocation2]  ;;  %p460_p0 = scmp.gt.s32.totalorder %s459_s1, 0 }
 0x1bf   : >> { %p778_p11 = scmp.lt.s32.totalorder %s459_s1, 63  ;;  %s475_s21 = sshll.u32 %s626_s13, 4  ;;  %s476_s21 = int_to_ptr.vmem [resolvable:$true] %s475_s21 }
 0x1c0   : >> { %s2096_s1 = smov (!%p460_p0, %s459_s1), 0 }
 0x1c1   : >> { %s2098_s1 = smov (!%p778_p11, %s2096_s1), 63 }
 0x1c2   : >> { %s783_s7 = sshll.u32 %s2098_s1, 4 }
 0x1c3   : >> { %s465_s27 = scalar_lea.hbm %s1984_s2, %s783_s7 }
 0x1c4   : >> { %s1285_s3 = scalar_lea.hbm %s465_s27, 16  ;;  %p1290_p1 = scmp.lt.s32.totalorder %s465_s27, %s1984_s2 }
 0x1c5   : >> { %p1286_p5 = scmp.ne.s32.totalorder %s465_s27, %s1285_s3  ;;  %p1291_p9 = scmp.lt.s32.totalorder %s1506_s28, %s1285_s3 }
 0x1c7   : >> { %p1287_p3 = pnand %p1286_p5, %p860_p6  ;;  %p1292_p12 = por %p1291_p9, %p1290_p1 }
 0x1c9   : >> { %p1288_p4 = pneg %p1287_p3 }
 0x1cb   : >> { %p1293_p13 = pnand %p1292_p12, %p1288_p4 }
 0x1cd   : >> { %1296 = shalt.err (!%p1293_p13)  }
 0x1ce   : >> { %s1297_s9 = scalar_lea.vmem %s476_s21, 16  ;;  %p1304_p0 = scmp.lt.s32.totalorder %s476_s21, %s1484_s8 }
 0x1cf   : >> { %p1298_p8 = scmp.ne.s32.totalorder %s476_s21, %s1297_s9  ;;  %p1305_p11 = scmp.lt.s32.totalorder %s1515_s6, %s1297_s9 }
 0x1d1   : >> { %p1299_p2 = pnand %p1298_p8, %p860_p6  ;;  %p1306_p5 = por %p1305_p11, %p1304_p0 }
 0x1d3   : >> { %p1300_p7 = pneg %p1299_p2 }
 0x1d5   : >> { %p1307_p3 = pnand %p1306_p5, %p1300_p7 }
 0x1d7   : >> { %1310 = shalt.err (!%p1307_p3)  }
 0x1d8   : >> { %853 = dma.hbm_to_vmem [thread:$0]  (%p860_p6), %s465_s27, 16, %s476_s21, %s1704_s17 }
 0x1d9   : >> { %s479_s10 = scalar_lea.sflag [#allocation3], %s2058_s12 }
 0x1da   : >> { %1359 = dma.done.wait %s479_s10, 128 }
 0x1db   : >> { %1360 = vsyncadd %s479_s10, 4294967168  ;;  %v1394_v0 = vmov 0   ;;  %s498_s1 = scalar_lea.vmem %s1482_s11, %s1662_s23  ;;  %s786_s16 = sshll.u32 %s2058_s12, 3 }
 0x1dc   : >> { %914 = vset.pattern.permute.xlu0 %v1394_v0  ;;  %v499_v1 = vld [vmem:[%s498_s1] sm:$0xff]  ;;  %s501_s0 = scalar_lea.vmem [#allocation2], %s786_s16  ;;  %s2015_s5 = scalar_lea.vmem [#allocation6], %s1473_s30 }
 0x1dd   : >> { %505 = vperm.xlu0 %914, %v499_v1   ;;  %v502_v2 = vld [vmem:[%s501_s0] sm:$0xff]  ;;  %s509_s15 = scalar_lea.vmem %s2015_s5, %s1662_s23 [#allocation6]  ;;  %s2016_s9 = smov %s1659_s22 }
 0x1de   : >> { %p2017_p6 = scmp.ge.s32.totalorder %s1659_s22, 2 }
 0x1df   : > { %s828_s24 = sshll.u32 (%p2017_p6), %s1442_s20, 8  ;;  %s2019_s25 = sld [smem:[#allocation62_spill]] (%p2017_p6) }
 0x1e0   : > { %s2020_s23 = scalar_lea.vmem (%p2017_p6), [#allocation6], %s1473_s30  ;;  %s2021_s7 = sand.u32 (%p2017_p6), 1, %s1371_s18  }
 0x1e1   : > { %s525_s21 = sshll.u32 (%p2017_p6), %s2020_s23, 4  ;;  %s1942_s22 = scalar_lea.sflag (%p2017_p6), [#allocation7], %s2021_s7  ;;  %s1938_s21 = int_to_ptr.vmem [resolvable:$true] %s525_s21 }
 0x1e2   : > { %s1311_s28 = scalar_lea.vmem (%p2017_p6), %s1938_s21, 256  ;;  %s1395_s20 = smov (%p2017_p6), [#allocation6]  }
 0x1e3   : > { %p1312_p4 = scmp.ne.s32.totalorder (%p2017_p6), %s1938_s21, %s1311_s28  ;;  %s1315_s8 = sshll.u32 (%p2017_p6), %s1395_s20, 4  ;;  %s1316_s8 = int_to_ptr.vmem [resolvable:$false] %s1315_s8 }
 0x1e4   : > { %s1317_s11 = scalar_lea.vmem (%p2017_p6), %s1316_s8, 512  ;;  %p1318_p12 = scmp.lt.s32.totalorder (%p2017_p6), %s1938_s21, %s1316_s8 }
 0x1e5   : > { %s1934_s13 = scalar_lea.hbm (%p2017_p6), %s2019_s25, %s828_s24  ;;  %p1313_p1 = pnand (%p2017_p6), %p1312_p4, %p1459_p10 }
 0x1e6   : > { %p1319_p13 = scmp.lt.s32.totalorder (%p2017_p6), %s1317_s11, %s1311_s28 }
 0x1e7   : > { %p1314_p9 = pneg (%p2017_p6), %p1313_p1 }
 0x1e8   : > { %p1320_p8 = por (%p2017_p6), %p1319_p13, %p1318_p12 }
 0x1ea   : > { %p1321_p2 = pnand (%p2017_p6), %p1320_p8, %p1314_p9 }
 0x257   : > { %289 = sbr.rel (!%p2017_p6) target bundleno = 231 (0xe7), region = 171 }
 0x258   : >> { %v506_v3 = vpop.permute.xlu0 %505 }
 0x259   : >> { %v508_v4 = vmul.f32 %v506_v3, %v502_v2 }
 0x25b   : >> { %510 = vst [vmem:[%s509_s15] sm:$0xff] %v508_v4 }
 0x25c   : > { %1324 = shalt.err (!%p1321_p2)
}
 0x25d   : > { %s1325_s30 = scalar_lea.hbm %s1934_s13, 256  ;;  %s1329_s19 = scalar_lea.hbm %s2019_s25, 768 }
 0x25e   : > { %p1326_p7 = scmp.ne.s32.totalorder %s1934_s13, %s1325_s30  ;;  %p1330_p5 = scmp.lt.s32.totalorder %s1934_s13, %s2019_s25 }
 0x25f   : > { %p1331_p3 = scmp.lt.s32.totalorder %s1329_s19, %s1325_s30 }
 0x260   : > { %p1327_p0 = pnand %p1326_p7, %p1459_p10 }
 0x261   : > { %p1332_p6 = por %p1331_p3, %p1330_p5 }
 0x262   : > { %p1328_p11 = pneg %p1327_p0 }
 0x264   : > { %p1333_p4 = pnand %p1332_p6, %p1328_p11 }
 0x266   : > { %1336 = shalt.err (!%p1333_p4)
}
 0x267   : > { %s1396_s14 = smov 128   ;;  %s1397_s26 = smov 8  }
 0x268   : > { %854 = dma.vmem_to_hbm [thread:$0]  (%p1459_p10), %s1938_s21, 256, %s1934_s13, %s1942_s22, %s1396_s14, %s1396_s14, %s1397_s26  }
 0x269 PF: > { %s2022_s9 = sld [smem:[#allocation55_spill]] }
 0x26a   : > { %s2023_s10 = sld [smem:[#allocation53_spill]] }
 0x26b   : > { %s2024_s1 = sld [smem:[#allocation59_spill]] }
 0x26f   : > { %p861_p1 = scmp.ge.s32.totalorder %s2022_s9, 2 }
 0x270   : > { %s540_s16 = sand.u32 1, %s2023_s10  }
 0x271   : > { %p2025_p9 = scmp.ne.s32.totalorder %s2024_s1, 0  ;;  %s541_s0 = scalar_lea.sflag [#allocation7], %s540_s16 }
 0x273   : > { %p857_p12 = pnand %p861_p1, %p2025_p9 }
 0x275   : > { %p858_p13 = pneg %p857_p12 }
 0x277   : > { %1362 = dma.done.wait (%p858_p13), %s541_s0, 256  }
 0x278   : > { %1364 = vsyncadd (%p858_p13), %s541_s0, 4294967040  ;;  %s2026_s19 = sld [smem:[#allocation56_spill]]  ;;  %s2029_s17 = smov %s1371_s18 }
 0x279   : > { %s2027_s5 = sld [smem:[#allocation54_spill]] }
 0x27a   : > { %s2028_s0 = sld [smem:[#allocation57_spill]] }
 0x27e   : > { %p19_p8 = scmp.ge.s32.totalorder %s2026_s19, 5  }
 0x27f   : > { %s2030_s18 = smov %s2027_s5 }
 0x280   :  { %21 = sbr.rel (!%p19_p8) target bundleno = 19 (0x13), region = 182 }
 0x285   :  { %546 = vsyncpa [#allocation7], 1 }
 0x286   :  { %548 = vsyncpa [#allocation7 + $0x1], 1 }
 0x287   :  { %549 = vsyncmov [#allocation3] }
 0x28a   :  { %s550_s15 = vpop.sfrf %549 }
 0x28b   :  { %p792_p10 = scmp.ne.s32.totalorder %s550_s15, 0 }
 0x28d   :  { %554 = shalt.err (%p792_p10)  }
 0x28e   :  { %556 = vsyncmov [#allocation3 + $0x1] }
 0x291   :  { %s557_s24 = vpop.sfrf %556 }
 0x292   :  { %p793_p2 = scmp.ne.s32.totalorder %s557_s24, 0 }
 0x294   :  { %561 = shalt.err (%p793_p2)  }

</bundles_post_ra>
